<compile_context>
chip_gen: v7x
topology: tpu7x:2x2x1
jax: 0.10.0
libtpu: 0.0.40
codegen_flags: <defaults>
</compile_context>

<pallas_src>
import math

import jax
import jax.numpy as jnp
from jax import lax
from jax.experimental import pallas as pl
from jax.experimental.pallas import tpu as pltpu


def _gru_encoder_kernel(emb_ref, len_ref, w_ih_ref, b_i_ref,
                        w_hh_f_ref, b_h_f_ref, w_hh_b_ref, b_h_b_ref,
                        outs_ref, hid_ref, gi_ref):
    """Bidirectional 1-layer GRU with packed-sequence (length-mask) semantics.

    emb_ref  : (S, TB, E)      f32  time-major input, one batch tile
    len_ref  : (TB, 1)         i32  valid lengths for this batch tile
    w_ih_ref : (E, 2*GP)       bf16 [fwd | bwd] input->gate weights, gates [r|z|n|pad]
    b_i_ref  : (1, 2*GP)       f32  input-side biases (b_ir+b_hr, b_iz+b_hz, b_in, 0)
    w_hh_*   : (H, GP)         bf16 hidden->gate weights per direction
    b_h_*    : (1, GP)         f32  hidden-side n-gate bias (0, 0, b_hn, 0)
    outs_ref : (2, S, TB, H)   f32  per-direction, zero-padded outputs
    hid_ref  : (2, TB, H)      f32  final hidden per direction
    gi_ref   : (2, S, TB, GP)  f32  VMEM scratch: hoisted input projections
    """
    S, TB, E = emb_ref.shape
    H = hid_ref.shape[-1]
    GP = w_hh_f_ref.shape[-1]            # padded gate width (3H -> 128-lane multiple)

    # ---- Hoisted input projection: ONE MXU matmul for all steps & both dirs ----
    emb2d = emb_ref[...].reshape(S * TB, E).astype(jnp.bfloat16)
    gi_all = jnp.dot(emb2d, w_ih_ref[...],
                     preferred_element_type=jnp.float32) + b_i_ref[...]  # (S*TB, 2GP)
    gi_ref[0] = gi_all[:, :GP].reshape(S, TB, GP)      # forward direction
    gi_ref[1] = gi_all[:, GP:].reshape(S, TB, GP)      # backward direction

    lengths = len_ref[...]               # (TB, 1) int32
    w_hh_f = w_hh_f_ref[...]
    w_hh_b = w_hh_b_ref[...]
    b_h_f = b_h_f_ref[...]
    b_h_b = b_h_b_ref[...]

    def run_direction(d, w_hh, b_h, reverse):
        def step(k, h):
            t = (S - 1 - k) if reverse else k
            gi = gi_ref[d, t]                                         # (TB, GP) f32
            # Single fused hidden-side matmul per step (1 MXU push, N = GP lanes).
            gh = jnp.dot(h.astype(jnp.bfloat16), w_hh,
                         preferred_element_type=jnp.float32) + b_h    # (TB, GP) f32
            r = jax.nn.sigmoid(gi[:, 0:H] + gh[:, 0:H])
            z = jax.nn.sigmoid(gi[:, H:2 * H] + gh[:, H:2 * H])
            n = jnp.tanh(gi[:, 2 * H:3 * H] + r * gh[:, 2 * H:3 * H])
            h_new = (1.0 - z) * n + z * h
            # packed-sequence semantics via in-kernel length compare (no mask tensor)
            m = (lengths > t).astype(jnp.float32)                     # (TB, 1)
            out_t = m * h_new                                         # zero past length
            outs_ref[d, t] = out_t
            return out_t + (1.0 - m) * h                              # freeze hidden
        h0 = jnp.zeros((TB, H), jnp.float32)
        return lax.fori_loop(0, S, step, h0, unroll=True)

    hid_ref[0] = run_direction(0, w_hh_f, b_h_f, reverse=False)
    hid_ref[1] = run_direction(1, w_hh_b, b_h_b, reverse=True)


def encoder_forward(inp, x_lengths, params, *, batch_tile=8):
    """inp: (B, S, E) float, x_lengths: (B,) int. Returns (out (B,S,2H), hid (2,B,H))."""
    B, S, E = inp.shape
    H = params["w_hh_f"].shape[0]
    TB = batch_tile
    BP = ((B + TB - 1) // TB) * TB                   # batch padded to sublane tiles
    GP = ((3 * H + 127) // 128) * 128                # 3H padded to 128-lane multiple

    # ---- host glue: pad batch, go time-major, pack per-direction weights ----
    inp_p = jnp.zeros((BP, S, E), jnp.float32).at[:B].set(inp.astype(jnp.float32))
    emb_tm = jnp.transpose(inp_p, (1, 0, 2))                       # (S, BP, E)
    len_p = jnp.zeros((BP, 1), jnp.int32).at[:B, 0].set(x_lengths.astype(jnp.int32))

    def pack_dir(w_ih, w_hh, b_ih, b_hh):
        # gates stored [r | z | n] along the last axis, padded to GP lanes
        w_ih_p = jnp.zeros((E, GP), jnp.float32).at[:, :3 * H].set(w_ih)
        w_hh_p = jnp.zeros((H, GP), jnp.float32).at[:, :3 * H].set(w_hh)
        b_i = jnp.zeros((1, GP), jnp.float32)
        b_i = b_i.at[:, 0:H].set(b_ih[:, 0:H] + b_hh[:, 0:H])               # r
        b_i = b_i.at[:, H:2 * H].set(b_ih[:, H:2 * H] + b_hh[:, H:2 * H])   # z
        b_i = b_i.at[:, 2 * H:3 * H].set(b_ih[:, 2 * H:3 * H])              # n (input side)
        b_h = jnp.zeros((1, GP), jnp.float32).at[:, 2 * H:3 * H].set(b_hh[:, 2 * H:3 * H])
        return w_ih_p, w_hh_p.astype(jnp.bfloat16), b_i, b_h

    wif, whf, bif, bhf = pack_dir(params["w_ih_f"], params["w_hh_f"],
                                  params["b_ih_f"], params["b_hh_f"])
    wib, whb, bib, bhb = pack_dir(params["w_ih_b"], params["w_hh_b"],
                                  params["b_ih_b"], params["b_hh_b"])
    w_ih_cat = jnp.concatenate([wif, wib], axis=1).astype(jnp.bfloat16)   # (E, 2GP)
    b_i_cat = jnp.concatenate([bif, bib], axis=1)                          # (1, 2GP)

    outs, hid = pl.pallas_call(
        _gru_encoder_kernel,
        out_shape=(jax.ShapeDtypeStruct((2, S, BP, H), jnp.float32),
                   jax.ShapeDtypeStruct((2, BP, H), jnp.float32)),
        grid=(BP // TB,),                                          # batch tiles
        in_specs=[
            pl.BlockSpec((S, TB, E), lambda i: (0, i, 0)),         # embedded input
            pl.BlockSpec((TB, 1), lambda i: (i, 0)),               # lengths
            pl.BlockSpec((E, 2 * GP), lambda i: (0, 0)),           # W_ih (both dirs)
            pl.BlockSpec((1, 2 * GP), lambda i: (0, 0)),           # input-side biases
            pl.BlockSpec((H, GP), lambda i: (0, 0)),               # W_hh fwd
            pl.BlockSpec((1, GP), lambda i: (0, 0)),               # b_hn fwd
            pl.BlockSpec((H, GP), lambda i: (0, 0)),               # W_hh bwd
            pl.BlockSpec((1, GP), lambda i: (0, 0)),               # b_hn bwd
        ],
        out_specs=(pl.BlockSpec((2, S, TB, H), lambda i: (0, 0, i, 0)),
                   pl.BlockSpec((2, TB, H), lambda i: (0, i, 0))),
        scratch_shapes=[pltpu.VMEM((2, S, TB, GP), jnp.float32)],  # hoisted projections
        compiler_params=pltpu.CompilerParams(
            dimension_semantics=("parallel",),                     # 2nd TC on v7x
            vmem_limit_bytes=32 * 1024 * 1024),
    )(emb_tm, len_p, w_ih_cat, b_i_cat, whf, bhf, whb, bhb)

    # layout plumbing on host (no in-kernel transposes)
    out = jnp.transpose(outs, (2, 1, 0, 3)).reshape(BP, S, 2 * H)[:B]   # (B, S, 2H)
    hid = hid[:, :B, :]                                                 # (2, B, H)
    return out, hid


def encoder_reference(inp, x_lengths, params):
    """Pure-JAX f32 mirror of the PyTorch bidirectional GRU + pack/pad semantics."""
    B, S, E = inp.shape
    H = params["w_hh_f"].shape[0]
    x_lengths = x_lengths.astype(jnp.int32)

    def run(w_ih, w_hh, b_ih, b_hh, reverse):
        h = jnp.zeros((B, H), jnp.float32)
        outs = [None] * S
        order = range(S - 1, -1, -1) if reverse else range(S)
        for t in order:
            x_t = inp[:, t, :].astype(jnp.float32)
            m = (t < x_lengths).astype(jnp.float32)[:, None]
            gi = x_t @ w_ih + b_ih
            gh = h @ w_hh + b_hh
            r = jax.nn.sigmoid(gi[:, :H] + gh[:, :H])
            z = jax.nn.sigmoid(gi[:, H:2 * H] + gh[:, H:2 * H])
            n = jnp.tanh(gi[:, 2 * H:] + r * gh[:, 2 * H:])
            h_new = (1.0 - z) * n + z * h
            outs[t] = m * h_new
            h = m * h_new + (1.0 - m) * h
        return jnp.stack(outs, axis=1), h               # (B, S, H), (B, H)

    out_f, hid_f = run(params["w_ih_f"], params["w_hh_f"],
                       params["b_ih_f"], params["b_hh_f"], reverse=False)
    out_b, hid_b = run(params["w_ih_b"], params["w_hh_b"],
                       params["b_ih_b"], params["b_hh_b"], reverse=True)
    out = jnp.concatenate([out_f, out_b], axis=-1)      # (B, S, 2H)
    hid = jnp.stack([hid_f, hid_b], axis=0)             # (2, B, H)
    return out, hid


def init_params(key, E, H):
    ks = jax.random.split(key, 8)
    kh = 1.0 / math.sqrt(H)

    def u(k, shape):
        return jax.random.uniform(k, shape, jnp.float32, -kh, kh)

    # PyTorch GRU weights, pre-transposed to (in_features, 3H); gate order [r|z|n]
    return {
        "w_ih_f": u(ks[0], (E, 3 * H)), "w_hh_f": u(ks[1], (H, 3 * H)),
        "b_ih_f": u(ks[2], (1, 3 * H)), "b_hh_f": u(ks[3], (1, 3 * H)),
        "w_ih_b": u(ks[4], (E, 3 * H)), "w_hh_b": u(ks[5], (H, 3 * H)),
        "b_ih_b": u(ks[6], (1, 3 * H)), "b_hh_b": u(ks[7], (1, 3 * H)),
    }


if __name__ == "__main__":
    B, S, E, H = 2, 8, 16, 32

    key = jax.random.PRNGKey(0)
    kp, kx = jax.random.split(key)
    params = init_params(kp, E, H)
    inp = jax.random.normal(kx, (B, S, E), jnp.float32)   # already-embedded sequences
    x_lengths = jnp.array([S, S - 3], dtype=jnp.int32)    # ragged lengths (unsorted OK)

    out, hid = encoder_forward(inp, x_lengths, params)
    jax.block_until_ready((out, hid))

    ref_out, ref_hid = encoder_reference(inp, x_lengths, params)
    assert out.shape == (B, S, 2 * H) and hid.shape == (2, B, H)
    # bf16 MXU operands (f32 accumulation) inside the kernel vs a pure-f32
    # reference -> allow ~1e-2 level differences.
    assert jnp.allclose(out, ref_out, atol=3e-2, rtol=3e-2), \
        float(jnp.max(jnp.abs(out - ref_out)))
    assert jnp.allclose(hid, ref_hid, atol=3e-2, rtol=3e-2), \
        float(jnp.max(jnp.abs(hid - ref_hid)))
    # pad_packed_sequence(padding_value=0.0): padded steps must be exactly zero
    assert jnp.all(out[1, S - 3:, :] == 0.0)
    print("KERNEL_OK")
</pallas_src>

<mosaic_0001>
module attributes {stable_mosaic.version = 11 : i64} {
  func.func @_gru_encoder_kernel(%arg0: i32, %arg1: memref<8x8x16xf32, #tpu.memory_space<vmem>>, %arg2: memref<8x1xi32, #tpu.memory_space<vmem>>, %arg3: memref<16x256xbf16, #tpu.memory_space<vmem>>, %arg4: memref<1x256xf32, #tpu.memory_space<vmem>>, %arg5: memref<32x128xbf16, #tpu.memory_space<vmem>>, %arg6: memref<1x128xf32, #tpu.memory_space<vmem>>, %arg7: memref<32x128xbf16, #tpu.memory_space<vmem>>, %arg8: memref<1x128xf32, #tpu.memory_space<vmem>>, %arg9: memref<2x8x8x32xf32, #tpu.memory_space<vmem>>, %arg10: memref<2x8x32xf32, #tpu.memory_space<vmem>>, %arg11: memref<2x8x8x128xf32, #tpu.memory_space<vmem>>) attributes {dimension_semantics = [#tpu.dimension_semantics<parallel>], iteration_bounds = array<i64: 1>, scalar_prefetch = 0 : i64, scratch_operands = 1 : i64, tpu.core_type = #tpu.core_type<tc>, window_params = [{transform_indices = @transform_0, window_bounds = array<i64: 8, 8, 16>}, {transform_indices = @transform_1, window_bounds = array<i64: 8, 1>}, {pipeline_mode = #tpu.pipeline_mode<synchronous>, transform_indices = @transform_2, window_bounds = array<i64: 16, 256>}, {pipeline_mode = #tpu.pipeline_mode<synchronous>, transform_indices = @transform_3, window_bounds = array<i64: 1, 256>}, {pipeline_mode = #tpu.pipeline_mode<synchronous>, transform_indices = @transform_4, window_bounds = array<i64: 32, 128>}, {pipeline_mode = #tpu.pipeline_mode<synchronous>, transform_indices = @transform_5, window_bounds = array<i64: 1, 128>}, {pipeline_mode = #tpu.pipeline_mode<synchronous>, transform_indices = @transform_6, window_bounds = array<i64: 32, 128>}, {pipeline_mode = #tpu.pipeline_mode<synchronous>, transform_indices = @transform_7, window_bounds = array<i64: 1, 128>}, {transform_indices = @transform_8, window_bounds = array<i64: 2, 8, 8, 32>}, {transform_indices = @transform_9, window_bounds = array<i64: 2, 8, 32>}]} {
    %c0 = arith.constant 0 : index
    %c0_0 = arith.constant 0 : index
    %c0_1 = arith.constant 0 : index
    %0 = vector.load %arg1[%c0, %c0_0, %c0_1] : memref<8x8x16xf32, #tpu.memory_space<vmem>>, vector<8x8x16xf32>
    %1 = vector.shape_cast %0 : vector<8x8x16xf32> to vector<64x16xf32>
    %2 = arith.truncf %1 : vector<64x16xf32> to vector<64x16xbf16>
    %c0_2 = arith.constant 0 : index
    %c0_3 = arith.constant 0 : index
    %3 = vector.load %arg3[%c0_2, %c0_3] : memref<16x256xbf16, #tpu.memory_space<vmem>>, vector<16x256xbf16>
    %cst = arith.constant dense<0.000000e+00> : vector<64x256xf32>
    %4 = tpu.matmul %2, %3, %cst {dimension_numbers = #tpu.dot_dimension_numbers<[1], [0], [0], [1], [0, 0, 1, 1], [], []>} : vector<64x16xbf16>, vector<16x256xbf16>, vector<64x256xf32> -> vector<64x256xf32>
    %c0_4 = arith.constant 0 : index
    %c0_5 = arith.constant 0 : index
    %5 = vector.load %arg4[%c0_4, %c0_5] : memref<1x256xf32, #tpu.memory_space<vmem>>, vector<1x256xf32>
    %6 = vector.broadcast %5 : vector<1x256xf32> to vector<64x256xf32>
    %7 = arith.addf %4, %6 : vector<64x256xf32>
    %8 = vector.extract_strided_slice %7 {offsets = [0, 0], sizes = [64, 128], strides = [1, 1]} : vector<64x256xf32> to vector<64x128xf32>
    %9 = vector.shape_cast %8 : vector<64x128xf32> to vector<8x8x128xf32>
    %c0_6 = arith.constant 0 : index
    %c0_7 = arith.constant 0 : index
    %c0_8 = arith.constant 0 : index
    %c0_9 = arith.constant 0 : index
    %10 = vector.load %arg11[%c0_6, %c0_7, %c0_8, %c0_9] : memref<2x8x8x128xf32, #tpu.memory_space<vmem>>, vector<1x8x8x128xf32>
    %11 = vector.shape_cast %10 : vector<1x8x8x128xf32> to vector<8x8x128xf32>
    %12 = vector.shape_cast %9 : vector<8x8x128xf32> to vector<1x8x8x128xf32>
    tpu.vector_store %arg11[%c0_6, %c0_7, %c0_8, %c0_9], %12 {strides = array<i32>} : memref<2x8x8x128xf32, #tpu.memory_space<vmem>>, vector<1x8x8x128xf32>,
    %13 = vector.extract_strided_slice %7 {offsets = [0, 128], sizes = [64, 128], strides = [1, 1]} : vector<64x256xf32> to vector<64x128xf32>
    %14 = vector.shape_cast %13 : vector<64x128xf32> to vector<8x8x128xf32>
    %c1 = arith.constant 1 : index
    %c0_10 = arith.constant 0 : index
    %c0_11 = arith.constant 0 : index
    %c0_12 = arith.constant 0 : index
    %15 = vector.load %arg11[%c1, %c0_10, %c0_11, %c0_12] : memref<2x8x8x128xf32, #tpu.memory_space<vmem>>, vector<1x8x8x128xf32>
    %16 = vector.shape_cast %15 : vector<1x8x8x128xf32> to vector<8x8x128xf32>
    %17 = vector.shape_cast %14 : vector<8x8x128xf32> to vector<1x8x8x128xf32>
    tpu.vector_store %arg11[%c1, %c0_10, %c0_11, %c0_12], %17 {strides = array<i32>} : memref<2x8x8x128xf32, #tpu.memory_space<vmem>>, vector<1x8x8x128xf32>,
    %c0_13 = arith.constant 0 : index
    %c0_14 = arith.constant 0 : index
    %18 = vector.load %arg2[%c0_13, %c0_14] : memref<8x1xi32, #tpu.memory_space<vmem>>, vector<8x1xi32>
    %c0_15 = arith.constant 0 : index
    %c0_16 = arith.constant 0 : index
    %19 = vector.load %arg5[%c0_15, %c0_16] : memref<32x128xbf16, #tpu.memory_space<vmem>>, vector<32x128xbf16>
    %c0_17 = arith.constant 0 : index
    %c0_18 = arith.constant 0 : index
    %20 = vector.load %arg7[%c0_17, %c0_18] : memref<32x128xbf16, #tpu.memory_space<vmem>>, vector<32x128xbf16>
    %c0_19 = arith.constant 0 : index
    %c0_20 = arith.constant 0 : index
    %21 = vector.load %arg6[%c0_19, %c0_20] : memref<1x128xf32, #tpu.memory_space<vmem>>, vector<1x128xf32>
    %c0_21 = arith.constant 0 : index
    %c0_22 = arith.constant 0 : index
    %22 = vector.load %arg8[%c0_21, %c0_22] : memref<1x128xf32, #tpu.memory_space<vmem>>, vector<1x128xf32>
    %cst_23 = arith.constant 0.000000e+00 : f32
    %23 = vector.broadcast %cst_23 : f32 to vector<8x32xf32>
    %c0_i32 = arith.constant 0 : i32
    %c0_24 = arith.constant 0 : index
    %24 = arith.index_cast %c0_i32 : i32 to index
    %c0_25 = arith.constant 0 : index
    %c0_26 = arith.constant 0 : index
    %25 = vector.load %arg11[%c0_24, %24, %c0_25, %c0_26] : memref<2x8x8x128xf32, #tpu.memory_space<vmem>>, vector<1x1x8x128xf32>
    %26 = vector.shape_cast %25 : vector<1x1x8x128xf32> to vector<8x128xf32>
    %27 = arith.truncf %23 : vector<8x32xf32> to vector<8x32xbf16>
    %cst_27 = arith.constant dense<0.000000e+00> : vector<8x128xf32>
    %28 = tpu.matmul %27, %19, %cst_27 {dimension_numbers = #tpu.dot_dimension_numbers<[1], [0], [0], [1], [0, 0, 1, 1], [], []>} : vector<8x32xbf16>, vector<32x128xbf16>, vector<8x128xf32> -> vector<8x128xf32>
    %29 = vector.broadcast %21 : vector<1x128xf32> to vector<8x128xf32>
    %30 = arith.addf %28, %29 : vector<8x128xf32>
    %31 = vector.extract_strided_slice %26 {offsets = [0, 0], sizes = [8, 32], strides = [1, 1]} : vector<8x128xf32> to vector<8x32xf32>
    %32 = vector.extract_strided_slice %30 {offsets = [0, 0], sizes = [8, 32], strides = [1, 1]} : vector<8x128xf32> to vector<8x32xf32>
    %33 = arith.addf %31, %32 : vector<8x32xf32>
    %34 = arith.negf %33 : vector<8x32xf32>
    %35 = math.exp %34 : vector<8x32xf32>
    %cst_28 = arith.constant 1.000000e+00 : f32
    %36 = vector.broadcast %cst_28 : f32 to vector<8x32xf32>
    %37 = arith.addf %36, %35 : vector<8x32xf32>
    %38 = arith.divf %36, %37 : vector<8x32xf32>
    %39 = vector.extract_strided_slice %26 {offsets = [0, 32], sizes = [8, 32], strides = [1, 1]} : vector<8x128xf32> to vector<8x32xf32>
    %40 = vector.extract_strided_slice %30 {offsets = [0, 32], sizes = [8, 32], strides = [1, 1]} : vector<8x128xf32> to vector<8x32xf32>
    %41 = arith.addf %39, %40 : vector<8x32xf32>
    %42 = arith.negf %41 : vector<8x32xf32>
    %43 = math.exp %42 : vector<8x32xf32>
    %cst_29 = arith.constant 1.000000e+00 : f32
    %44 = vector.broadcast %cst_29 : f32 to vector<8x32xf32>
    %45 = arith.addf %44, %43 : vector<8x32xf32>
    %46 = arith.divf %44, %45 : vector<8x32xf32>
    %47 = vector.extract_strided_slice %26 {offsets = [0, 64], sizes = [8, 32], strides = [1, 1]} : vector<8x128xf32> to vector<8x32xf32>
    %48 = vector.extract_strided_slice %30 {offsets = [0, 64], sizes = [8, 32], strides = [1, 1]} : vector<8x128xf32> to vector<8x32xf32>
    %49 = arith.mulf %38, %48 : vector<8x32xf32>
    %50 = arith.addf %47, %49 : vector<8x32xf32>
    %51 = math.tanh %50 : vector<8x32xf32>
    %cst_30 = arith.constant 1.000000e+00 : f32
    %52 = vector.broadcast %cst_30 : f32 to vector<8x32xf32>
    %53 = arith.subf %52, %46 : vector<8x32xf32>
    %54 = arith.mulf %53, %51 : vector<8x32xf32>
    %55 = arith.mulf %46, %23 : vector<8x32xf32>
    %56 = arith.addf %54, %55 : vector<8x32xf32>
    %57 = vector.broadcast %c0_i32 : i32 to vector<8x1xi32>
    %58 = arith.cmpi sgt, %18, %57 : vector<8x1xi32>
    %59 = arith.extui %58 : vector<8x1xi1> to vector<8x1xi32>
    %60 = arith.sitofp %59 : vector<8x1xi32> to vector<8x1xf32>
    %61 = vector.broadcast %60 : vector<8x1xf32> to vector<8x32xf32>
    %62 = arith.mulf %61, %56 : vector<8x32xf32>
    %c0_31 = arith.constant 0 : index
    %63 = arith.index_cast %c0_i32 : i32 to index
    %c0_32 = arith.constant 0 : index
    %c0_33 = arith.constant 0 : index
    %64 = vector.load %arg9[%c0_31, %63, %c0_32, %c0_33] : memref<2x8x8x32xf32, #tpu.memory_space<vmem>>, vector<1x1x8x32xf32>
    %65 = vector.shape_cast %64 : vector<1x1x8x32xf32> to vector<8x32xf32>
    %66 = vector.shape_cast %62 : vector<8x32xf32> to vector<1x1x8x32xf32>
    tpu.vector_store %arg9[%c0_31, %63, %c0_32, %c0_33], %66 {strides = array<i32>} : memref<2x8x8x32xf32, #tpu.memory_space<vmem>>, vector<1x1x8x32xf32>,
    %cst_34 = arith.constant 1.000000e+00 : f32
    %67 = vector.broadcast %cst_34 : f32 to vector<8x1xf32>
    %68 = arith.subf %67, %60 : vector<8x1xf32>
    %69 = vector.broadcast %68 : vector<8x1xf32> to vector<8x32xf32>
    %70 = arith.mulf %69, %23 : vector<8x32xf32>
    %71 = arith.addf %62, %70 : vector<8x32xf32>
    %c1_i32 = arith.constant 1 : i32
    %c0_35 = arith.constant 0 : index
    %72 = arith.index_cast %c1_i32 : i32 to index
    %c0_36 = arith.constant 0 : index
    %c0_37 = arith.constant 0 : index
    %73 = vector.load %arg11[%c0_35, %72, %c0_36, %c0_37] : memref<2x8x8x128xf32, #tpu.memory_space<vmem>>, vector<1x1x8x128xf32>
    %74 = vector.shape_cast %73 : vector<1x1x8x128xf32> to vector<8x128xf32>
    %75 = arith.truncf %71 : vector<8x32xf32> to vector<8x32xbf16>
    %cst_38 = arith.constant dense<0.000000e+00> : vector<8x128xf32>
    %76 = tpu.matmul %75, %19, %cst_38 {dimension_numbers = #tpu.dot_dimension_numbers<[1], [0], [0], [1], [0, 0, 1, 1], [], []>} : vector<8x32xbf16>, vector<32x128xbf16>, vector<8x128xf32> -> vector<8x128xf32>
    %77 = vector.broadcast %21 : vector<1x128xf32> to vector<8x128xf32>
    %78 = arith.addf %76, %77 : vector<8x128xf32>
    %79 = vector.extract_strided_slice %74 {offsets = [0, 0], sizes = [8, 32], strides = [1, 1]} : vector<8x128xf32> to vector<8x32xf32>
    %80 = vector.extract_strided_slice %78 {offsets = [0, 0], sizes = [8, 32], strides = [1, 1]} : vector<8x128xf32> to vector<8x32xf32>
    %81 = arith.addf %79, %80 : vector<8x32xf32>
    %82 = arith.negf %81 : vector<8x32xf32>
    %83 = math.exp %82 : vector<8x32xf32>
    %cst_39 = arith.constant 1.000000e+00 : f32
    %84 = vector.broadcast %cst_39 : f32 to vector<8x32xf32>
    %85 = arith.addf %84, %83 : vector<8x32xf32>
    %86 = arith.divf %84, %85 : vector<8x32xf32>
    %87 = vector.extract_strided_slice %74 {offsets = [0, 32], sizes = [8, 32], strides = [1, 1]} : vector<8x128xf32> to vector<8x32xf32>
    %88 = vector.extract_strided_slice %78 {offsets = [0, 32], sizes = [8, 32], strides = [1, 1]} : vector<8x128xf32> to vector<8x32xf32>
    %89 = arith.addf %87, %88 : vector<8x32xf32>
    %90 = arith.negf %89 : vector<8x32xf32>
    %91 = math.exp %90 : vector<8x32xf32>
    %cst_40 = arith.constant 1.000000e+00 : f32
    %92 = vector.broadcast %cst_40 : f32 to vector<8x32xf32>
    %93 = arith.addf %92, %91 : vector<8x32xf32>
    %94 = arith.divf %92, %93 : vector<8x32xf32>
    %95 = vector.extract_strided_slice %74 {offsets = [0, 64], sizes = [8, 32], strides = [1, 1]} : vector<8x128xf32> to vector<8x32xf32>
    %96 = vector.extract_strided_slice %78 {offsets = [0, 64], sizes = [8, 32], strides = [1, 1]} : vector<8x128xf32> to vector<8x32xf32>
    %97 = arith.mulf %86, %96 : vector<8x32xf32>
    %98 = arith.addf %95, %97 : vector<8x32xf32>
    %99 = math.tanh %98 : vector<8x32xf32>
    %cst_41 = arith.constant 1.000000e+00 : f32
    %100 = vector.broadcast %cst_41 : f32 to vector<8x32xf32>
    %101 = arith.subf %100, %94 : vector<8x32xf32>
    %102 = arith.mulf %101, %99 : vector<8x32xf32>
    %103 = arith.mulf %94, %71 : vector<8x32xf32>
    %104 = arith.addf %102, %103 : vector<8x32xf32>
    %105 = vector.broadcast %c1_i32 : i32 to vector<8x1xi32>
    %106 = arith.cmpi sgt, %18, %105 : vector<8x1xi32>
    %107 = arith.extui %106 : vector<8x1xi1> to vector<8x1xi32>
    %108 = arith.sitofp %107 : vector<8x1xi32> to vector<8x1xf32>
    %109 = vector.broadcast %108 : vector<8x1xf32> to vector<8x32xf32>
    %110 = arith.mulf %109, %104 : vector<8x32xf32>
    %c0_42 = arith.constant 0 : index
    %111 = arith.index_cast %c1_i32 : i32 to index
    %c0_43 = arith.constant 0 : index
    %c0_44 = arith.constant 0 : index
    %112 = vector.load %arg9[%c0_42, %111, %c0_43, %c0_44] : memref<2x8x8x32xf32, #tpu.memory_space<vmem>>, vector<1x1x8x32xf32>
    %113 = vector.shape_cast %112 : vector<1x1x8x32xf32> to vector<8x32xf32>
    %114 = vector.shape_cast %110 : vector<8x32xf32> to vector<1x1x8x32xf32>
    tpu.vector_store %arg9[%c0_42, %111, %c0_43, %c0_44], %114 {strides = array<i32>} : memref<2x8x8x32xf32, #tpu.memory_space<vmem>>, vector<1x1x8x32xf32>,
    %cst_45 = arith.constant 1.000000e+00 : f32
    %115 = vector.broadcast %cst_45 : f32 to vector<8x1xf32>
    %116 = arith.subf %115, %108 : vector<8x1xf32>
    %117 = vector.broadcast %116 : vector<8x1xf32> to vector<8x32xf32>
    %118 = arith.mulf %117, %71 : vector<8x32xf32>
    %119 = arith.addf %110, %118 : vector<8x32xf32>
    %c2_i32 = arith.constant 2 : i32
    %c0_46 = arith.constant 0 : index
    %120 = arith.index_cast %c2_i32 : i32 to index
    %c0_47 = arith.constant 0 : index
    %c0_48 = arith.constant 0 : index
    %121 = vector.load %arg11[%c0_46, %120, %c0_47, %c0_48] : memref<2x8x8x128xf32, #tpu.memory_space<vmem>>, vector<1x1x8x128xf32>
    %122 = vector.shape_cast %121 : vector<1x1x8x128xf32> to vector<8x128xf32>
    %123 = arith.truncf %119 : vector<8x32xf32> to vector<8x32xbf16>
    %cst_49 = arith.constant dense<0.000000e+00> : vector<8x128xf32>
    %124 = tpu.matmul %123, %19, %cst_49 {dimension_numbers = #tpu.dot_dimension_numbers<[1], [0], [0], [1], [0, 0, 1, 1], [], []>} : vector<8x32xbf16>, vector<32x128xbf16>, vector<8x128xf32> -> vector<8x128xf32>
    %125 = vector.broadcast %21 : vector<1x128xf32> to vector<8x128xf32>
    %126 = arith.addf %124, %125 : vector<8x128xf32>
    %127 = vector.extract_strided_slice %122 {offsets = [0, 0], sizes = [8, 32], strides = [1, 1]} : vector<8x128xf32> to vector<8x32xf32>
    %128 = vector.extract_strided_slice %126 {offsets = [0, 0], sizes = [8, 32], strides = [1, 1]} : vector<8x128xf32> to vector<8x32xf32>
    %129 = arith.addf %127, %128 : vector<8x32xf32>
    %130 = arith.negf %129 : vector<8x32xf32>
    %131 = math.exp %130 : vector<8x32xf32>
    %cst_50 = arith.constant 1.000000e+00 : f32
    %132 = vector.broadcast %cst_50 : f32 to vector<8x32xf32>
    %133 = arith.addf %132, %131 : vector<8x32xf32>
    %134 = arith.divf %132, %133 : vector<8x32xf32>
    %135 = vector.extract_strided_slice %122 {offsets = [0, 32], sizes = [8, 32], strides = [1, 1]} : vector<8x128xf32> to vector<8x32xf32>
    %136 = vector.extract_strided_slice %126 {offsets = [0, 32], sizes = [8, 32], strides = [1, 1]} : vector<8x128xf32> to vector<8x32xf32>
    %137 = arith.addf %135, %136 : vector<8x32xf32>
    %138 = arith.negf %137 : vector<8x32xf32>
    %139 = math.exp %138 : vector<8x32xf32>
    %cst_51 = arith.constant 1.000000e+00 : f32
    %140 = vector.broadcast %cst_51 : f32 to vector<8x32xf32>
    %141 = arith.addf %140, %139 : vector<8x32xf32>
    %142 = arith.divf %140, %141 : vector<8x32xf32>
    %143 = vector.extract_strided_slice %122 {offsets = [0, 64], sizes = [8, 32], strides = [1, 1]} : vector<8x128xf32> to vector<8x32xf32>
    %144 = vector.extract_strided_slice %126 {offsets = [0, 64], sizes = [8, 32], strides = [1, 1]} : vector<8x128xf32> to vector<8x32xf32>
    %145 = arith.mulf %134, %144 : vector<8x32xf32>
    %146 = arith.addf %143, %145 : vector<8x32xf32>
    %147 = math.tanh %146 : vector<8x32xf32>
    %cst_52 = arith.constant 1.000000e+00 : f32
    %148 = vector.broadcast %cst_52 : f32 to vector<8x32xf32>
    %149 = arith.subf %148, %142 : vector<8x32xf32>
    %150 = arith.mulf %149, %147 : vector<8x32xf32>
    %151 = arith.mulf %142, %119 : vector<8x32xf32>
    %152 = arith.addf %150, %151 : vector<8x32xf32>
    %153 = vector.broadcast %c2_i32 : i32 to vector<8x1xi32>
    %154 = arith.cmpi sgt, %18, %153 : vector<8x1xi32>
    %155 = arith.extui %154 : vector<8x1xi1> to vector<8x1xi32>
    %156 = arith.sitofp %155 : vector<8x1xi32> to vector<8x1xf32>
    %157 = vector.broadcast %156 : vector<8x1xf32> to vector<8x32xf32>
    %158 = arith.mulf %157, %152 : vector<8x32xf32>
    %c0_53 = arith.constant 0 : index
    %159 = arith.index_cast %c2_i32 : i32 to index
    %c0_54 = arith.constant 0 : index
    %c0_55 = arith.constant 0 : index
    %160 = vector.load %arg9[%c0_53, %159, %c0_54, %c0_55] : memref<2x8x8x32xf32, #tpu.memory_space<vmem>>, vector<1x1x8x32xf32>
    %161 = vector.shape_cast %160 : vector<1x1x8x32xf32> to vector<8x32xf32>
    %162 = vector.shape_cast %158 : vector<8x32xf32> to vector<1x1x8x32xf32>
    tpu.vector_store %arg9[%c0_53, %159, %c0_54, %c0_55], %162 {strides = array<i32>} : memref<2x8x8x32xf32, #tpu.memory_space<vmem>>, vector<1x1x8x32xf32>,
    %cst_56 = arith.constant 1.000000e+00 : f32
    %163 = vector.broadcast %cst_56 : f32 to vector<8x1xf32>
    %164 = arith.subf %163, %156 : vector<8x1xf32>
    %165 = vector.broadcast %164 : vector<8x1xf32> to vector<8x32xf32>
    %166 = arith.mulf %165, %119 : vector<8x32xf32>
    %167 = arith.addf %158, %166 : vector<8x32xf32>
    %c3_i32 = arith.constant 3 : i32
    %c0_57 = arith.constant 0 : index
    %168 = arith.index_cast %c3_i32 : i32 to index
    %c0_58 = arith.constant 0 : index
    %c0_59 = arith.constant 0 : index
    %169 = vector.load %arg11[%c0_57, %168, %c0_58, %c0_59] : memref<2x8x8x128xf32, #tpu.memory_space<vmem>>, vector<1x1x8x128xf32>
    %170 = vector.shape_cast %169 : vector<1x1x8x128xf32> to vector<8x128xf32>
    %171 = arith.truncf %167 : vector<8x32xf32> to vector<8x32xbf16>
    %cst_60 = arith.constant dense<0.000000e+00> : vector<8x128xf32>
    %172 = tpu.matmul %171, %19, %cst_60 {dimension_numbers = #tpu.dot_dimension_numbers<[1], [0], [0], [1], [0, 0, 1, 1], [], []>} : vector<8x32xbf16>, vector<32x128xbf16>, vector<8x128xf32> -> vector<8x128xf32>
    %173 = vector.broadcast %21 : vector<1x128xf32> to vector<8x128xf32>
    %174 = arith.addf %172, %173 : vector<8x128xf32>
    %175 = vector.extract_strided_slice %170 {offsets = [0, 0], sizes = [8, 32], strides = [1, 1]} : vector<8x128xf32> to vector<8x32xf32>
    %176 = vector.extract_strided_slice %174 {offsets = [0, 0], sizes = [8, 32], strides = [1, 1]} : vector<8x128xf32> to vector<8x32xf32>
    %177 = arith.addf %175, %176 : vector<8x32xf32>
    %178 = arith.negf %177 : vector<8x32xf32>
    %179 = math.exp %178 : vector<8x32xf32>
    %cst_61 = arith.constant 1.000000e+00 : f32
    %180 = vector.broadcast %cst_61 : f32 to vector<8x32xf32>
    %181 = arith.addf %180, %179 : vector<8x32xf32>
    %182 = arith.divf %180, %181 : vector<8x32xf32>
    %183 = vector.extract_strided_slice %170 {offsets = [0, 32], sizes = [8, 32], strides = [1, 1]} : vector<8x128xf32> to vector<8x32xf32>
    %184 = vector.extract_strided_slice %174 {offsets = [0, 32], sizes = [8, 32], strides = [1, 1]} : vector<8x128xf32> to vector<8x32xf32>
    %185 = arith.addf %183, %184 : vector<8x32xf32>
    %186 = arith.negf %185 : vector<8x32xf32>
    %187 = math.exp %186 : vector<8x32xf32>
    %cst_62 = arith.constant 1.000000e+00 : f32
    %188 = vector.broadcast %cst_62 : f32 to vector<8x32xf32>
    %189 = arith.addf %188, %187 : vector<8x32xf32>
    %190 = arith.divf %188, %189 : vector<8x32xf32>
    %191 = vector.extract_strided_slice %170 {offsets = [0, 64], sizes = [8, 32], strides = [1, 1]} : vector<8x128xf32> to vector<8x32xf32>
    %192 = vector.extract_strided_slice %174 {offsets = [0, 64], sizes = [8, 32], strides = [1, 1]} : vector<8x128xf32> to vector<8x32xf32>
    %193 = arith.mulf %182, %192 : vector<8x32xf32>
    %194 = arith.addf %191, %193 : vector<8x32xf32>
    %195 = math.tanh %194 : vector<8x32xf32>
    %cst_63 = arith.constant 1.000000e+00 : f32
    %196 = vector.broadcast %cst_63 : f32 to vector<8x32xf32>
    %197 = arith.subf %196, %190 : vector<8x32xf32>
    %198 = arith.mulf %197, %195 : vector<8x32xf32>
    %199 = arith.mulf %190, %167 : vector<8x32xf32>
    %200 = arith.addf %198, %199 : vector<8x32xf32>
    %201 = vector.broadcast %c3_i32 : i32 to vector<8x1xi32>
    %202 = arith.cmpi sgt, %18, %201 : vector<8x1xi32>
    %203 = arith.extui %202 : vector<8x1xi1> to vector<8x1xi32>
    %204 = arith.sitofp %203 : vector<8x1xi32> to vector<8x1xf32>
    %205 = vector.broadcast %204 : vector<8x1xf32> to vector<8x32xf32>
    %206 = arith.mulf %205, %200 : vector<8x32xf32>
    %c0_64 = arith.constant 0 : index
    %207 = arith.index_cast %c3_i32 : i32 to index
    %c0_65 = arith.constant 0 : index
    %c0_66 = arith.constant 0 : index
    %208 = vector.load %arg9[%c0_64, %207, %c0_65, %c0_66] : memref<2x8x8x32xf32, #tpu.memory_space<vmem>>, vector<1x1x8x32xf32>
    %209 = vector.shape_cast %208 : vector<1x1x8x32xf32> to vector<8x32xf32>
    %210 = vector.shape_cast %206 : vector<8x32xf32> to vector<1x1x8x32xf32>
    tpu.vector_store %arg9[%c0_64, %207, %c0_65, %c0_66], %210 {strides = array<i32>} : memref<2x8x8x32xf32, #tpu.memory_space<vmem>>, vector<1x1x8x32xf32>,
    %cst_67 = arith.constant 1.000000e+00 : f32
    %211 = vector.broadcast %cst_67 : f32 to vector<8x1xf32>
    %212 = arith.subf %211, %204 : vector<8x1xf32>
    %213 = vector.broadcast %212 : vector<8x1xf32> to vector<8x32xf32>
    %214 = arith.mulf %213, %167 : vector<8x32xf32>
    %215 = arith.addf %206, %214 : vector<8x32xf32>
    %c4_i32 = arith.constant 4 : i32
    %c0_68 = arith.constant 0 : index
    %216 = arith.index_cast %c4_i32 : i32 to index
    %c0_69 = arith.constant 0 : index
    %c0_70 = arith.constant 0 : index
    %217 = vector.load %arg11[%c0_68, %216, %c0_69, %c0_70] : memref<2x8x8x128xf32, #tpu.memory_space<vmem>>, vector<1x1x8x128xf32>
    %218 = vector.shape_cast %217 : vector<1x1x8x128xf32> to vector<8x128xf32>
    %219 = arith.truncf %215 : vector<8x32xf32> to vector<8x32xbf16>
    %cst_71 = arith.constant dense<0.000000e+00> : vector<8x128xf32>
    %220 = tpu.matmul %219, %19, %cst_71 {dimension_numbers = #tpu.dot_dimension_numbers<[1], [0], [0], [1], [0, 0, 1, 1], [], []>} : vector<8x32xbf16>, vector<32x128xbf16>, vector<8x128xf32> -> vector<8x128xf32>
    %221 = vector.broadcast %21 : vector<1x128xf32> to vector<8x128xf32>
    %222 = arith.addf %220, %221 : vector<8x128xf32>
    %223 = vector.extract_strided_slice %218 {offsets = [0, 0], sizes = [8, 32], strides = [1, 1]} : vector<8x128xf32> to vector<8x32xf32>
    %224 = vector.extract_strided_slice %222 {offsets = [0, 0], sizes = [8, 32], strides = [1, 1]} : vector<8x128xf32> to vector<8x32xf32>
    %225 = arith.addf %223, %224 : vector<8x32xf32>
    %226 = arith.negf %225 : vector<8x32xf32>
    %227 = math.exp %226 : vector<8x32xf32>
    %cst_72 = arith.constant 1.000000e+00 : f32
    %228 = vector.broadcast %cst_72 : f32 to vector<8x32xf32>
    %229 = arith.addf %228, %227 : vector<8x32xf32>
    %230 = arith.divf %228, %229 : vector<8x32xf32>
    %231 = vector.extract_strided_slice %218 {offsets = [0, 32], sizes = [8, 32], strides = [1, 1]} : vector<8x128xf32> to vector<8x32xf32>
    %232 = vector.extract_strided_slice %222 {offsets = [0, 32], sizes = [8, 32], strides = [1, 1]} : vector<8x128xf32> to vector<8x32xf32>
    %233 = arith.addf %231, %232 : vector<8x32xf32>
    %234 = arith.negf %233 : vector<8x32xf32>
    %235 = math.exp %234 : vector<8x32xf32>
    %cst_73 = arith.constant 1.000000e+00 : f32
    %236 = vector.broadcast %cst_73 : f32 to vector<8x32xf32>
    %237 = arith.addf %236, %235 : vector<8x32xf32>
    %238 = arith.divf %236, %237 : vector<8x32xf32>
    %239 = vector.extract_strided_slice %218 {offsets = [0, 64], sizes = [8, 32], strides = [1, 1]} : vector<8x128xf32> to vector<8x32xf32>
    %240 = vector.extract_strided_slice %222 {offsets = [0, 64], sizes = [8, 32], strides = [1, 1]} : vector<8x128xf32> to vector<8x32xf32>
    %241 = arith.mulf %230, %240 : vector<8x32xf32>
    %242 = arith.addf %239, %241 : vector<8x32xf32>
    %243 = math.tanh %242 : vector<8x32xf32>
    %cst_74 = arith.constant 1.000000e+00 : f32
    %244 = vector.broadcast %cst_74 : f32 to vector<8x32xf32>
    %245 = arith.subf %244, %238 : vector<8x32xf32>
    %246 = arith.mulf %245, %243 : vector<8x32xf32>
    %247 = arith.mulf %238, %215 : vector<8x32xf32>
    %248 = arith.addf %246, %247 : vector<8x32xf32>
    %249 = vector.broadcast %c4_i32 : i32 to vector<8x1xi32>
    %250 = arith.cmpi sgt, %18, %249 : vector<8x1xi32>
    %251 = arith.extui %250 : vector<8x1xi1> to vector<8x1xi32>
    %252 = arith.sitofp %251 : vector<8x1xi32> to vector<8x1xf32>
    %253 = vector.broadcast %252 : vector<8x1xf32> to vector<8x32xf32>
    %254 = arith.mulf %253, %248 : vector<8x32xf32>
    %c0_75 = arith.constant 0 : index
    %255 = arith.index_cast %c4_i32 : i32 to index
    %c0_76 = arith.constant 0 : index
    %c0_77 = arith.constant 0 : index
    %256 = vector.load %arg9[%c0_75, %255, %c0_76, %c0_77] : memref<2x8x8x32xf32, #tpu.memory_space<vmem>>, vector<1x1x8x32xf32>
    %257 = vector.shape_cast %256 : vector<1x1x8x32xf32> to vector<8x32xf32>
    %258 = vector.shape_cast %254 : vector<8x32xf32> to vector<1x1x8x32xf32>
    tpu.vector_store %arg9[%c0_75, %255, %c0_76, %c0_77], %258 {strides = array<i32>} : memref<2x8x8x32xf32, #tpu.memory_space<vmem>>, vector<1x1x8x32xf32>,
    %cst_78 = arith.constant 1.000000e+00 : f32
    %259 = vector.broadcast %cst_78 : f32 to vector<8x1xf32>
    %260 = arith.subf %259, %252 : vector<8x1xf32>
    %261 = vector.broadcast %260 : vector<8x1xf32> to vector<8x32xf32>
    %262 = arith.mulf %261, %215 : vector<8x32xf32>
    %263 = arith.addf %254, %262 : vector<8x32xf32>
    %c5_i32 = arith.constant 5 : i32
    %c0_79 = arith.constant 0 : index
    %264 = arith.index_cast %c5_i32 : i32 to index
    %c0_80 = arith.constant 0 : index
    %c0_81 = arith.constant 0 : index
    %265 = vector.load %arg11[%c0_79, %264, %c0_80, %c0_81] : memref<2x8x8x128xf32, #tpu.memory_space<vmem>>, vector<1x1x8x128xf32>
    %266 = vector.shape_cast %265 : vector<1x1x8x128xf32> to vector<8x128xf32>
    %267 = arith.truncf %263 : vector<8x32xf32> to vector<8x32xbf16>
    %cst_82 = arith.constant dense<0.000000e+00> : vector<8x128xf32>
    %268 = tpu.matmul %267, %19, %cst_82 {dimension_numbers = #tpu.dot_dimension_numbers<[1], [0], [0], [1], [0, 0, 1, 1], [], []>} : vector<8x32xbf16>, vector<32x128xbf16>, vector<8x128xf32> -> vector<8x128xf32>
    %269 = vector.broadcast %21 : vector<1x128xf32> to vector<8x128xf32>
    %270 = arith.addf %268, %269 : vector<8x128xf32>
    %271 = vector.extract_strided_slice %266 {offsets = [0, 0], sizes = [8, 32], strides = [1, 1]} : vector<8x128xf32> to vector<8x32xf32>
    %272 = vector.extract_strided_slice %270 {offsets = [0, 0], sizes = [8, 32], strides = [1, 1]} : vector<8x128xf32> to vector<8x32xf32>
    %273 = arith.addf %271, %272 : vector<8x32xf32>
    %274 = arith.negf %273 : vector<8x32xf32>
    %275 = math.exp %274 : vector<8x32xf32>
    %cst_83 = arith.constant 1.000000e+00 : f32
    %276 = vector.broadcast %cst_83 : f32 to vector<8x32xf32>
    %277 = arith.addf %276, %275 : vector<8x32xf32>
    %278 = arith.divf %276, %277 : vector<8x32xf32>
    %279 = vector.extract_strided_slice %266 {offsets = [0, 32], sizes = [8, 32], strides = [1, 1]} : vector<8x128xf32> to vector<8x32xf32>
    %280 = vector.extract_strided_slice %270 {offsets = [0, 32], sizes = [8, 32], strides = [1, 1]} : vector<8x128xf32> to vector<8x32xf32>
    %281 = arith.addf %279, %280 : vector<8x32xf32>
    %282 = arith.negf %281 : vector<8x32xf32>
    %283 = math.exp %282 : vector<8x32xf32>
    %cst_84 = arith.constant 1.000000e+00 : f32
    %284 = vector.broadcast %cst_84 : f32 to vector<8x32xf32>
    %285 = arith.addf %284, %283 : vector<8x32xf32>
    %286 = arith.divf %284, %285 : vector<8x32xf32>
    %287 = vector.extract_strided_slice %266 {offsets = [0, 64], sizes = [8, 32], strides = [1, 1]} : vector<8x128xf32> to vector<8x32xf32>
    %288 = vector.extract_strided_slice %270 {offsets = [0, 64], sizes = [8, 32], strides = [1, 1]} : vector<8x128xf32> to vector<8x32xf32>
    %289 = arith.mulf %278, %288 : vector<8x32xf32>
    %290 = arith.addf %287, %289 : vector<8x32xf32>
    %291 = math.tanh %290 : vector<8x32xf32>
    %cst_85 = arith.constant 1.000000e+00 : f32
    %292 = vector.broadcast %cst_85 : f32 to vector<8x32xf32>
    %293 = arith.subf %292, %286 : vector<8x32xf32>
    %294 = arith.mulf %293, %291 : vector<8x32xf32>
    %295 = arith.mulf %286, %263 : vector<8x32xf32>
    %296 = arith.addf %294, %295 : vector<8x32xf32>
    %297 = vector.broadcast %c5_i32 : i32 to vector<8x1xi32>
    %298 = arith.cmpi sgt, %18, %297 : vector<8x1xi32>
    %299 = arith.extui %298 : vector<8x1xi1> to vector<8x1xi32>
    %300 = arith.sitofp %299 : vector<8x1xi32> to vector<8x1xf32>
    %301 = vector.broadcast %300 : vector<8x1xf32> to vector<8x32xf32>
    %302 = arith.mulf %301, %296 : vector<8x32xf32>
    %c0_86 = arith.constant 0 : index
    %303 = arith.index_cast %c5_i32 : i32 to index
    %c0_87 = arith.constant 0 : index
    %c0_88 = arith.constant 0 : index
    %304 = vector.load %arg9[%c0_86, %303, %c0_87, %c0_88] : memref<2x8x8x32xf32, #tpu.memory_space<vmem>>, vector<1x1x8x32xf32>
    %305 = vector.shape_cast %304 : vector<1x1x8x32xf32> to vector<8x32xf32>
    %306 = vector.shape_cast %302 : vector<8x32xf32> to vector<1x1x8x32xf32>
    tpu.vector_store %arg9[%c0_86, %303, %c0_87, %c0_88], %306 {strides = array<i32>} : memref<2x8x8x32xf32, #tpu.memory_space<vmem>>, vector<1x1x8x32xf32>,
    %cst_89 = arith.constant 1.000000e+00 : f32
    %307 = vector.broadcast %cst_89 : f32 to vector<8x1xf32>
    %308 = arith.subf %307, %300 : vector<8x1xf32>
    %309 = vector.broadcast %308 : vector<8x1xf32> to vector<8x32xf32>
    %310 = arith.mulf %309, %263 : vector<8x32xf32>
    %311 = arith.addf %302, %310 : vector<8x32xf32>
    %c6_i32 = arith.constant 6 : i32
    %c0_90 = arith.constant 0 : index
    %312 = arith.index_cast %c6_i32 : i32 to index
    %c0_91 = arith.constant 0 : index
    %c0_92 = arith.constant 0 : index
    %313 = vector.load %arg11[%c0_90, %312, %c0_91, %c0_92] : memref<2x8x8x128xf32, #tpu.memory_space<vmem>>, vector<1x1x8x128xf32>
    %314 = vector.shape_cast %313 : vector<1x1x8x128xf32> to vector<8x128xf32>
    %315 = arith.truncf %311 : vector<8x32xf32> to vector<8x32xbf16>
    %cst_93 = arith.constant dense<0.000000e+00> : vector<8x128xf32>
    %316 = tpu.matmul %315, %19, %cst_93 {dimension_numbers = #tpu.dot_dimension_numbers<[1], [0], [0], [1], [0, 0, 1, 1], [], []>} : vector<8x32xbf16>, vector<32x128xbf16>, vector<8x128xf32> -> vector<8x128xf32>
    %317 = vector.broadcast %21 : vector<1x128xf32> to vector<8x128xf32>
    %318 = arith.addf %316, %317 : vector<8x128xf32>
    %319 = vector.extract_strided_slice %314 {offsets = [0, 0], sizes = [8, 32], strides = [1, 1]} : vector<8x128xf32> to vector<8x32xf32>
    %320 = vector.extract_strided_slice %318 {offsets = [0, 0], sizes = [8, 32], strides = [1, 1]} : vector<8x128xf32> to vector<8x32xf32>
    %321 = arith.addf %319, %320 : vector<8x32xf32>
    %322 = arith.negf %321 : vector<8x32xf32>
    %323 = math.exp %322 : vector<8x32xf32>
    %cst_94 = arith.constant 1.000000e+00 : f32
    %324 = vector.broadcast %cst_94 : f32 to vector<8x32xf32>
    %325 = arith.addf %324, %323 : vector<8x32xf32>
    %326 = arith.divf %324, %325 : vector<8x32xf32>
    %327 = vector.extract_strided_slice %314 {offsets = [0, 32], sizes = [8, 32], strides = [1, 1]} : vector<8x128xf32> to vector<8x32xf32>
    %328 = vector.extract_strided_slice %318 {offsets = [0, 32], sizes = [8, 32], strides = [1, 1]} : vector<8x128xf32> to vector<8x32xf32>
    %329 = arith.addf %327, %328 : vector<8x32xf32>
    %330 = arith.negf %329 : vector<8x32xf32>
    %331 = math.exp %330 : vector<8x32xf32>
    %cst_95 = arith.constant 1.000000e+00 : f32
    %332 = vector.broadcast %cst_95 : f32 to vector<8x32xf32>
    %333 = arith.addf %332, %331 : vector<8x32xf32>
    %334 = arith.divf %332, %333 : vector<8x32xf32>
    %335 = vector.extract_strided_slice %314 {offsets = [0, 64], sizes = [8, 32], strides = [1, 1]} : vector<8x128xf32> to vector<8x32xf32>
    %336 = vector.extract_strided_slice %318 {offsets = [0, 64], sizes = [8, 32], strides = [1, 1]} : vector<8x128xf32> to vector<8x32xf32>
    %337 = arith.mulf %326, %336 : vector<8x32xf32>
    %338 = arith.addf %335, %337 : vector<8x32xf32>
    %339 = math.tanh %338 : vector<8x32xf32>
    %cst_96 = arith.constant 1.000000e+00 : f32
    %340 = vector.broadcast %cst_96 : f32 to vector<8x32xf32>
    %341 = arith.subf %340, %334 : vector<8x32xf32>
    %342 = arith.mulf %341, %339 : vector<8x32xf32>
    %343 = arith.mulf %334, %311 : vector<8x32xf32>
    %344 = arith.addf %342, %343 : vector<8x32xf32>
    %345 = vector.broadcast %c6_i32 : i32 to vector<8x1xi32>
    %346 = arith.cmpi sgt, %18, %345 : vector<8x1xi32>
    %347 = arith.extui %346 : vector<8x1xi1> to vector<8x1xi32>
    %348 = arith.sitofp %347 : vector<8x1xi32> to vector<8x1xf32>
    %349 = vector.broadcast %348 : vector<8x1xf32> to vector<8x32xf32>
    %350 = arith.mulf %349, %344 : vector<8x32xf32>
    %c0_97 = arith.constant 0 : index
    %351 = arith.index_cast %c6_i32 : i32 to index
    %c0_98 = arith.constant 0 : index
    %c0_99 = arith.constant 0 : index
    %352 = vector.load %arg9[%c0_97, %351, %c0_98, %c0_99] : memref<2x8x8x32xf32, #tpu.memory_space<vmem>>, vector<1x1x8x32xf32>
    %353 = vector.shape_cast %352 : vector<1x1x8x32xf32> to vector<8x32xf32>
    %354 = vector.shape_cast %350 : vector<8x32xf32> to vector<1x1x8x32xf32>
    tpu.vector_store %arg9[%c0_97, %351, %c0_98, %c0_99], %354 {strides = array<i32>} : memref<2x8x8x32xf32, #tpu.memory_space<vmem>>, vector<1x1x8x32xf32>,
    %cst_100 = arith.constant 1.000000e+00 : f32
    %355 = vector.broadcast %cst_100 : f32 to vector<8x1xf32>
    %356 = arith.subf %355, %348 : vector<8x1xf32>
    %357 = vector.broadcast %356 : vector<8x1xf32> to vector<8x32xf32>
    %358 = arith.mulf %357, %311 : vector<8x32xf32>
    %359 = arith.addf %350, %358 : vector<8x32xf32>
    %c7_i32 = arith.constant 7 : i32
    %c0_101 = arith.constant 0 : index
    %360 = arith.index_cast %c7_i32 : i32 to index
    %c0_102 = arith.constant 0 : index
    %c0_103 = arith.constant 0 : index
    %361 = vector.load %arg11[%c0_101, %360, %c0_102, %c0_103] : memref<2x8x8x128xf32, #tpu.memory_space<vmem>>, vector<1x1x8x128xf32>
    %362 = vector.shape_cast %361 : vector<1x1x8x128xf32> to vector<8x128xf32>
    %363 = arith.truncf %359 : vector<8x32xf32> to vector<8x32xbf16>
    %cst_104 = arith.constant dense<0.000000e+00> : vector<8x128xf32>
    %364 = tpu.matmul %363, %19, %cst_104 {dimension_numbers = #tpu.dot_dimension_numbers<[1], [0], [0], [1], [0, 0, 1, 1], [], []>} : vector<8x32xbf16>, vector<32x128xbf16>, vector<8x128xf32> -> vector<8x128xf32>
    %365 = vector.broadcast %21 : vector<1x128xf32> to vector<8x128xf32>
    %366 = arith.addf %364, %365 : vector<8x128xf32>
    %367 = vector.extract_strided_slice %362 {offsets = [0, 0], sizes = [8, 32], strides = [1, 1]} : vector<8x128xf32> to vector<8x32xf32>
    %368 = vector.extract_strided_slice %366 {offsets = [0, 0], sizes = [8, 32], strides = [1, 1]} : vector<8x128xf32> to vector<8x32xf32>
    %369 = arith.addf %367, %368 : vector<8x32xf32>
    %370 = arith.negf %369 : vector<8x32xf32>
    %371 = math.exp %370 : vector<8x32xf32>
    %cst_105 = arith.constant 1.000000e+00 : f32
    %372 = vector.broadcast %cst_105 : f32 to vector<8x32xf32>
    %373 = arith.addf %372, %371 : vector<8x32xf32>
    %374 = arith.divf %372, %373 : vector<8x32xf32>
    %375 = vector.extract_strided_slice %362 {offsets = [0, 32], sizes = [8, 32], strides = [1, 1]} : vector<8x128xf32> to vector<8x32xf32>
    %376 = vector.extract_strided_slice %366 {offsets = [0, 32], sizes = [8, 32], strides = [1, 1]} : vector<8x128xf32> to vector<8x32xf32>
    %377 = arith.addf %375, %376 : vector<8x32xf32>
    %378 = arith.negf %377 : vector<8x32xf32>
    %379 = math.exp %378 : vector<8x32xf32>
    %cst_106 = arith.constant 1.000000e+00 : f32
    %380 = vector.broadcast %cst_106 : f32 to vector<8x32xf32>
    %381 = arith.addf %380, %379 : vector<8x32xf32>
    %382 = arith.divf %380, %381 : vector<8x32xf32>
    %383 = vector.extract_strided_slice %362 {offsets = [0, 64], sizes = [8, 32], strides = [1, 1]} : vector<8x128xf32> to vector<8x32xf32>
    %384 = vector.extract_strided_slice %366 {offsets = [0, 64], sizes = [8, 32], strides = [1, 1]} : vector<8x128xf32> to vector<8x32xf32>
    %385 = arith.mulf %374, %384 : vector<8x32xf32>
    %386 = arith.addf %383, %385 : vector<8x32xf32>
    %387 = math.tanh %386 : vector<8x32xf32>
    %cst_107 = arith.constant 1.000000e+00 : f32
    %388 = vector.broadcast %cst_107 : f32 to vector<8x32xf32>
    %389 = arith.subf %388, %382 : vector<8x32xf32>
    %390 = arith.mulf %389, %387 : vector<8x32xf32>
    %391 = arith.mulf %382, %359 : vector<8x32xf32>
    %392 = arith.addf %390, %391 : vector<8x32xf32>
    %393 = vector.broadcast %c7_i32 : i32 to vector<8x1xi32>
    %394 = arith.cmpi sgt, %18, %393 : vector<8x1xi32>
    %395 = arith.extui %394 : vector<8x1xi1> to vector<8x1xi32>
    %396 = arith.sitofp %395 : vector<8x1xi32> to vector<8x1xf32>
    %397 = vector.broadcast %396 : vector<8x1xf32> to vector<8x32xf32>
    %398 = arith.mulf %397, %392 : vector<8x32xf32>
    %c0_108 = arith.constant 0 : index
    %399 = arith.index_cast %c7_i32 : i32 to index
    %c0_109 = arith.constant 0 : index
    %c0_110 = arith.constant 0 : index
    %400 = vector.load %arg9[%c0_108, %399, %c0_109, %c0_110] : memref<2x8x8x32xf32, #tpu.memory_space<vmem>>, vector<1x1x8x32xf32>
    %401 = vector.shape_cast %400 : vector<1x1x8x32xf32> to vector<8x32xf32>
    %402 = vector.shape_cast %398 : vector<8x32xf32> to vector<1x1x8x32xf32>
    tpu.vector_store %arg9[%c0_108, %399, %c0_109, %c0_110], %402 {strides = array<i32>} : memref<2x8x8x32xf32, #tpu.memory_space<vmem>>, vector<1x1x8x32xf32>,
    %cst_111 = arith.constant 1.000000e+00 : f32
    %403 = vector.broadcast %cst_111 : f32 to vector<8x1xf32>
    %404 = arith.subf %403, %396 : vector<8x1xf32>
    %405 = vector.broadcast %404 : vector<8x1xf32> to vector<8x32xf32>
    %406 = arith.mulf %405, %359 : vector<8x32xf32>
    %407 = arith.addf %398, %406 : vector<8x32xf32>
    %c8_i32 = arith.constant 8 : i32
    %c0_112 = arith.constant 0 : index
    %c0_113 = arith.constant 0 : index
    %c0_114 = arith.constant 0 : index
    %408 = vector.load %arg10[%c0_112, %c0_113, %c0_114] : memref<2x8x32xf32, #tpu.memory_space<vmem>>, vector<1x8x32xf32>
    %409 = vector.shape_cast %408 : vector<1x8x32xf32> to vector<8x32xf32>
    %410 = vector.shape_cast %407 : vector<8x32xf32> to vector<1x8x32xf32>
    tpu.vector_store %arg10[%c0_112, %c0_113, %c0_114], %410 {strides = array<i32>} : memref<2x8x32xf32, #tpu.memory_space<vmem>>, vector<1x8x32xf32>,
    %cst_115 = arith.constant 0.000000e+00 : f32
    %411 = vector.broadcast %cst_115 : f32 to vector<8x32xf32>
    %c0_i32_116 = arith.constant 0 : i32
    %c7_i32_117 = arith.constant 7 : i32
    %412 = arith.subi %c7_i32_117, %c0_i32_116 : i32
    %c1_118 = arith.constant 1 : index
    %413 = arith.index_cast %412 : i32 to index
    %c0_119 = arith.constant 0 : index
    %c0_120 = arith.constant 0 : index
    %414 = vector.load %arg11[%c1_118, %413, %c0_119, %c0_120] : memref<2x8x8x128xf32, #tpu.memory_space<vmem>>, vector<1x1x8x128xf32>
    %415 = vector.shape_cast %414 : vector<1x1x8x128xf32> to vector<8x128xf32>
    %416 = arith.truncf %411 : vector<8x32xf32> to vector<8x32xbf16>
    %cst_121 = arith.constant dense<0.000000e+00> : vector<8x128xf32>
    %417 = tpu.matmul %416, %20, %cst_121 {dimension_numbers = #tpu.dot_dimension_numbers<[1], [0], [0], [1], [0, 0, 1, 1], [], []>} : vector<8x32xbf16>, vector<32x128xbf16>, vector<8x128xf32> -> vector<8x128xf32>
    %418 = vector.broadcast %22 : vector<1x128xf32> to vector<8x128xf32>
    %419 = arith.addf %417, %418 : vector<8x128xf32>
    %420 = vector.extract_strided_slice %415 {offsets = [0, 0], sizes = [8, 32], strides = [1, 1]} : vector<8x128xf32> to vector<8x32xf32>
    %421 = vector.extract_strided_slice %419 {offsets = [0, 0], sizes = [8, 32], strides = [1, 1]} : vector<8x128xf32> to vector<8x32xf32>
    %422 = arith.addf %420, %421 : vector<8x32xf32>
    %423 = arith.negf %422 : vector<8x32xf32>
    %424 = math.exp %423 : vector<8x32xf32>
    %cst_122 = arith.constant 1.000000e+00 : f32
    %425 = vector.broadcast %cst_122 : f32 to vector<8x32xf32>
    %426 = arith.addf %425, %424 : vector<8x32xf32>
    %427 = arith.divf %425, %426 : vector<8x32xf32>
    %428 = vector.extract_strided_slice %415 {offsets = [0, 32], sizes = [8, 32], strides = [1, 1]} : vector<8x128xf32> to vector<8x32xf32>
    %429 = vector.extract_strided_slice %419 {offsets = [0, 32], sizes = [8, 32], strides = [1, 1]} : vector<8x128xf32> to vector<8x32xf32>
    %430 = arith.addf %428, %429 : vector<8x32xf32>
    %431 = arith.negf %430 : vector<8x32xf32>
    %432 = math.exp %431 : vector<8x32xf32>
    %cst_123 = arith.constant 1.000000e+00 : f32
    %433 = vector.broadcast %cst_123 : f32 to vector<8x32xf32>
    %434 = arith.addf %433, %432 : vector<8x32xf32>
    %435 = arith.divf %433, %434 : vector<8x32xf32>
    %436 = vector.extract_strided_slice %415 {offsets = [0, 64], sizes = [8, 32], strides = [1, 1]} : vector<8x128xf32> to vector<8x32xf32>
    %437 = vector.extract_strided_slice %419 {offsets = [0, 64], sizes = [8, 32], strides = [1, 1]} : vector<8x128xf32> to vector<8x32xf32>
    %438 = arith.mulf %427, %437 : vector<8x32xf32>
    %439 = arith.addf %436, %438 : vector<8x32xf32>
    %440 = math.tanh %439 : vector<8x32xf32>
    %cst_124 = arith.constant 1.000000e+00 : f32
    %441 = vector.broadcast %cst_124 : f32 to vector<8x32xf32>
    %442 = arith.subf %441, %435 : vector<8x32xf32>
    %443 = arith.mulf %442, %440 : vector<8x32xf32>
    %444 = arith.mulf %435, %411 : vector<8x32xf32>
    %445 = arith.addf %443, %444 : vector<8x32xf32>
    %446 = vector.broadcast %412 : i32 to vector<8x1xi32>
    %447 = arith.cmpi sgt, %18, %446 : vector<8x1xi32>
    %448 = arith.extui %447 : vector<8x1xi1> to vector<8x1xi32>
    %449 = arith.sitofp %448 : vector<8x1xi32> to vector<8x1xf32>
    %450 = vector.broadcast %449 : vector<8x1xf32> to vector<8x32xf32>
    %451 = arith.mulf %450, %445 : vector<8x32xf32>
    %c1_125 = arith.constant 1 : index
    %452 = arith.index_cast %412 : i32 to index
    %c0_126 = arith.constant 0 : index
    %c0_127 = arith.constant 0 : index
    %453 = vector.load %arg9[%c1_125, %452, %c0_126, %c0_127] : memref<2x8x8x32xf32, #tpu.memory_space<vmem>>, vector<1x1x8x32xf32>
    %454 = vector.shape_cast %453 : vector<1x1x8x32xf32> to vector<8x32xf32>
    %455 = vector.shape_cast %451 : vector<8x32xf32> to vector<1x1x8x32xf32>
    tpu.vector_store %arg9[%c1_125, %452, %c0_126, %c0_127], %455 {strides = array<i32>} : memref<2x8x8x32xf32, #tpu.memory_space<vmem>>, vector<1x1x8x32xf32>,
    %cst_128 = arith.constant 1.000000e+00 : f32
    %456 = vector.broadcast %cst_128 : f32 to vector<8x1xf32>
    %457 = arith.subf %456, %449 : vector<8x1xf32>
    %458 = vector.broadcast %457 : vector<8x1xf32> to vector<8x32xf32>
    %459 = arith.mulf %458, %411 : vector<8x32xf32>
    %460 = arith.addf %451, %459 : vector<8x32xf32>
    %c1_i32_129 = arith.constant 1 : i32
    %c7_i32_130 = arith.constant 7 : i32
    %461 = arith.subi %c7_i32_130, %c1_i32_129 : i32
    %c1_131 = arith.constant 1 : index
    %462 = arith.index_cast %461 : i32 to index
    %c0_132 = arith.constant 0 : index
    %c0_133 = arith.constant 0 : index
    %463 = vector.load %arg11[%c1_131, %462, %c0_132, %c0_133] : memref<2x8x8x128xf32, #tpu.memory_space<vmem>>, vector<1x1x8x128xf32>
    %464 = vector.shape_cast %463 : vector<1x1x8x128xf32> to vector<8x128xf32>
    %465 = arith.truncf %460 : vector<8x32xf32> to vector<8x32xbf16>
    %cst_134 = arith.constant dense<0.000000e+00> : vector<8x128xf32>
    %466 = tpu.matmul %465, %20, %cst_134 {dimension_numbers = #tpu.dot_dimension_numbers<[1], [0], [0], [1], [0, 0, 1, 1], [], []>} : vector<8x32xbf16>, vector<32x128xbf16>, vector<8x128xf32> -> vector<8x128xf32>
    %467 = vector.broadcast %22 : vector<1x128xf32> to vector<8x128xf32>
    %468 = arith.addf %466, %467 : vector<8x128xf32>
    %469 = vector.extract_strided_slice %464 {offsets = [0, 0], sizes = [8, 32], strides = [1, 1]} : vector<8x128xf32> to vector<8x32xf32>
    %470 = vector.extract_strided_slice %468 {offsets = [0, 0], sizes = [8, 32], strides = [1, 1]} : vector<8x128xf32> to vector<8x32xf32>
    %471 = arith.addf %469, %470 : vector<8x32xf32>
    %472 = arith.negf %471 : vector<8x32xf32>
    %473 = math.exp %472 : vector<8x32xf32>
    %cst_135 = arith.constant 1.000000e+00 : f32
    %474 = vector.broadcast %cst_135 : f32 to vector<8x32xf32>
    %475 = arith.addf %474, %473 : vector<8x32xf32>
    %476 = arith.divf %474, %475 : vector<8x32xf32>
    %477 = vector.extract_strided_slice %464 {offsets = [0, 32], sizes = [8, 32], strides = [1, 1]} : vector<8x128xf32> to vector<8x32xf32>
    %478 = vector.extract_strided_slice %468 {offsets = [0, 32], sizes = [8, 32], strides = [1, 1]} : vector<8x128xf32> to vector<8x32xf32>
    %479 = arith.addf %477, %478 : vector<8x32xf32>
    %480 = arith.negf %479 : vector<8x32xf32>
    %481 = math.exp %480 : vector<8x32xf32>
    %cst_136 = arith.constant 1.000000e+00 : f32
    %482 = vector.broadcast %cst_136 : f32 to vector<8x32xf32>
    %483 = arith.addf %482, %481 : vector<8x32xf32>
    %484 = arith.divf %482, %483 : vector<8x32xf32>
    %485 = vector.extract_strided_slice %464 {offsets = [0, 64], sizes = [8, 32], strides = [1, 1]} : vector<8x128xf32> to vector<8x32xf32>
    %486 = vector.extract_strided_slice %468 {offsets = [0, 64], sizes = [8, 32], strides = [1, 1]} : vector<8x128xf32> to vector<8x32xf32>
    %487 = arith.mulf %476, %486 : vector<8x32xf32>
    %488 = arith.addf %485, %487 : vector<8x32xf32>
    %489 = math.tanh %488 : vector<8x32xf32>
    %cst_137 = arith.constant 1.000000e+00 : f32
    %490 = vector.broadcast %cst_137 : f32 to vector<8x32xf32>
    %491 = arith.subf %490, %484 : vector<8x32xf32>
    %492 = arith.mulf %491, %489 : vector<8x32xf32>
    %493 = arith.mulf %484, %460 : vector<8x32xf32>
    %494 = arith.addf %492, %493 : vector<8x32xf32>
    %495 = vector.broadcast %461 : i32 to vector<8x1xi32>
    %496 = arith.cmpi sgt, %18, %495 : vector<8x1xi32>
    %497 = arith.extui %496 : vector<8x1xi1> to vector<8x1xi32>
    %498 = arith.sitofp %497 : vector<8x1xi32> to vector<8x1xf32>
    %499 = vector.broadcast %498 : vector<8x1xf32> to vector<8x32xf32>
    %500 = arith.mulf %499, %494 : vector<8x32xf32>
    %c1_138 = arith.constant 1 : index
    %501 = arith.index_cast %461 : i32 to index
    %c0_139 = arith.constant 0 : index
    %c0_140 = arith.constant 0 : index
    %502 = vector.load %arg9[%c1_138, %501, %c0_139, %c0_140] : memref<2x8x8x32xf32, #tpu.memory_space<vmem>>, vector<1x1x8x32xf32>
    %503 = vector.shape_cast %502 : vector<1x1x8x32xf32> to vector<8x32xf32>
    %504 = vector.shape_cast %500 : vector<8x32xf32> to vector<1x1x8x32xf32>
    tpu.vector_store %arg9[%c1_138, %501, %c0_139, %c0_140], %504 {strides = array<i32>} : memref<2x8x8x32xf32, #tpu.memory_space<vmem>>, vector<1x1x8x32xf32>,
    %cst_141 = arith.constant 1.000000e+00 : f32
    %505 = vector.broadcast %cst_141 : f32 to vector<8x1xf32>
    %506 = arith.subf %505, %498 : vector<8x1xf32>
    %507 = vector.broadcast %506 : vector<8x1xf32> to vector<8x32xf32>
    %508 = arith.mulf %507, %460 : vector<8x32xf32>
    %509 = arith.addf %500, %508 : vector<8x32xf32>
    %c2_i32_142 = arith.constant 2 : i32
    %c7_i32_143 = arith.constant 7 : i32
    %510 = arith.subi %c7_i32_143, %c2_i32_142 : i32
    %c1_144 = arith.constant 1 : index
    %511 = arith.index_cast %510 : i32 to index
    %c0_145 = arith.constant 0 : index
    %c0_146 = arith.constant 0 : index
    %512 = vector.load %arg11[%c1_144, %511, %c0_145, %c0_146] : memref<2x8x8x128xf32, #tpu.memory_space<vmem>>, vector<1x1x8x128xf32>
    %513 = vector.shape_cast %512 : vector<1x1x8x128xf32> to vector<8x128xf32>
    %514 = arith.truncf %509 : vector<8x32xf32> to vector<8x32xbf16>
    %cst_147 = arith.constant dense<0.000000e+00> : vector<8x128xf32>
    %515 = tpu.matmul %514, %20, %cst_147 {dimension_numbers = #tpu.dot_dimension_numbers<[1], [0], [0], [1], [0, 0, 1, 1], [], []>} : vector<8x32xbf16>, vector<32x128xbf16>, vector<8x128xf32> -> vector<8x128xf32>
    %516 = vector.broadcast %22 : vector<1x128xf32> to vector<8x128xf32>
    %517 = arith.addf %515, %516 : vector<8x128xf32>
    %518 = vector.extract_strided_slice %513 {offsets = [0, 0], sizes = [8, 32], strides = [1, 1]} : vector<8x128xf32> to vector<8x32xf32>
    %519 = vector.extract_strided_slice %517 {offsets = [0, 0], sizes = [8, 32], strides = [1, 1]} : vector<8x128xf32> to vector<8x32xf32>
    %520 = arith.addf %518, %519 : vector<8x32xf32>
    %521 = arith.negf %520 : vector<8x32xf32>
    %522 = math.exp %521 : vector<8x32xf32>
    %cst_148 = arith.constant 1.000000e+00 : f32
    %523 = vector.broadcast %cst_148 : f32 to vector<8x32xf32>
    %524 = arith.addf %523, %522 : vector<8x32xf32>
    %525 = arith.divf %523, %524 : vector<8x32xf32>
    %526 = vector.extract_strided_slice %513 {offsets = [0, 32], sizes = [8, 32], strides = [1, 1]} : vector<8x128xf32> to vector<8x32xf32>
    %527 = vector.extract_strided_slice %517 {offsets = [0, 32], sizes = [8, 32], strides = [1, 1]} : vector<8x128xf32> to vector<8x32xf32>
    %528 = arith.addf %526, %527 : vector<8x32xf32>
    %529 = arith.negf %528 : vector<8x32xf32>
    %530 = math.exp %529 : vector<8x32xf32>
    %cst_149 = arith.constant 1.000000e+00 : f32
    %531 = vector.broadcast %cst_149 : f32 to vector<8x32xf32>
    %532 = arith.addf %531, %530 : vector<8x32xf32>
    %533 = arith.divf %531, %532 : vector<8x32xf32>
    %534 = vector.extract_strided_slice %513 {offsets = [0, 64], sizes = [8, 32], strides = [1, 1]} : vector<8x128xf32> to vector<8x32xf32>
    %535 = vector.extract_strided_slice %517 {offsets = [0, 64], sizes = [8, 32], strides = [1, 1]} : vector<8x128xf32> to vector<8x32xf32>
    %536 = arith.mulf %525, %535 : vector<8x32xf32>
    %537 = arith.addf %534, %536 : vector<8x32xf32>
    %538 = math.tanh %537 : vector<8x32xf32>
    %cst_150 = arith.constant 1.000000e+00 : f32
    %539 = vector.broadcast %cst_150 : f32 to vector<8x32xf32>
    %540 = arith.subf %539, %533 : vector<8x32xf32>
    %541 = arith.mulf %540, %538 : vector<8x32xf32>
    %542 = arith.mulf %533, %509 : vector<8x32xf32>
    %543 = arith.addf %541, %542 : vector<8x32xf32>
    %544 = vector.broadcast %510 : i32 to vector<8x1xi32>
    %545 = arith.cmpi sgt, %18, %544 : vector<8x1xi32>
    %546 = arith.extui %545 : vector<8x1xi1> to vector<8x1xi32>
    %547 = arith.sitofp %546 : vector<8x1xi32> to vector<8x1xf32>
    %548 = vector.broadcast %547 : vector<8x1xf32> to vector<8x32xf32>
    %549 = arith.mulf %548, %543 : vector<8x32xf32>
    %c1_151 = arith.constant 1 : index
    %550 = arith.index_cast %510 : i32 to index
    %c0_152 = arith.constant 0 : index
    %c0_153 = arith.constant 0 : index
    %551 = vector.load %arg9[%c1_151, %550, %c0_152, %c0_153] : memref<2x8x8x32xf32, #tpu.memory_space<vmem>>, vector<1x1x8x32xf32>
    %552 = vector.shape_cast %551 : vector<1x1x8x32xf32> to vector<8x32xf32>
    %553 = vector.shape_cast %549 : vector<8x32xf32> to vector<1x1x8x32xf32>
    tpu.vector_store %arg9[%c1_151, %550, %c0_152, %c0_153], %553 {strides = array<i32>} : memref<2x8x8x32xf32, #tpu.memory_space<vmem>>, vector<1x1x8x32xf32>,
    %cst_154 = arith.constant 1.000000e+00 : f32
    %554 = vector.broadcast %cst_154 : f32 to vector<8x1xf32>
    %555 = arith.subf %554, %547 : vector<8x1xf32>
    %556 = vector.broadcast %555 : vector<8x1xf32> to vector<8x32xf32>
    %557 = arith.mulf %556, %509 : vector<8x32xf32>
    %558 = arith.addf %549, %557 : vector<8x32xf32>
    %c3_i32_155 = arith.constant 3 : i32
    %c7_i32_156 = arith.constant 7 : i32
    %559 = arith.subi %c7_i32_156, %c3_i32_155 : i32
    %c1_157 = arith.constant 1 : index
    %560 = arith.index_cast %559 : i32 to index
    %c0_158 = arith.constant 0 : index
    %c0_159 = arith.constant 0 : index
    %561 = vector.load %arg11[%c1_157, %560, %c0_158, %c0_159] : memref<2x8x8x128xf32, #tpu.memory_space<vmem>>, vector<1x1x8x128xf32>
    %562 = vector.shape_cast %561 : vector<1x1x8x128xf32> to vector<8x128xf32>
    %563 = arith.truncf %558 : vector<8x32xf32> to vector<8x32xbf16>
    %cst_160 = arith.constant dense<0.000000e+00> : vector<8x128xf32>
    %564 = tpu.matmul %563, %20, %cst_160 {dimension_numbers = #tpu.dot_dimension_numbers<[1], [0], [0], [1], [0, 0, 1, 1], [], []>} : vector<8x32xbf16>, vector<32x128xbf16>, vector<8x128xf32> -> vector<8x128xf32>
    %565 = vector.broadcast %22 : vector<1x128xf32> to vector<8x128xf32>
    %566 = arith.addf %564, %565 : vector<8x128xf32>
    %567 = vector.extract_strided_slice %562 {offsets = [0, 0], sizes = [8, 32], strides = [1, 1]} : vector<8x128xf32> to vector<8x32xf32>
    %568 = vector.extract_strided_slice %566 {offsets = [0, 0], sizes = [8, 32], strides = [1, 1]} : vector<8x128xf32> to vector<8x32xf32>
    %569 = arith.addf %567, %568 : vector<8x32xf32>
    %570 = arith.negf %569 : vector<8x32xf32>
    %571 = math.exp %570 : vector<8x32xf32>
    %cst_161 = arith.constant 1.000000e+00 : f32
    %572 = vector.broadcast %cst_161 : f32 to vector<8x32xf32>
    %573 = arith.addf %572, %571 : vector<8x32xf32>
    %574 = arith.divf %572, %573 : vector<8x32xf32>
    %575 = vector.extract_strided_slice %562 {offsets = [0, 32], sizes = [8, 32], strides = [1, 1]} : vector<8x128xf32> to vector<8x32xf32>
    %576 = vector.extract_strided_slice %566 {offsets = [0, 32], sizes = [8, 32], strides = [1, 1]} : vector<8x128xf32> to vector<8x32xf32>
    %577 = arith.addf %575, %576 : vector<8x32xf32>
    %578 = arith.negf %577 : vector<8x32xf32>
    %579 = math.exp %578 : vector<8x32xf32>
    %cst_162 = arith.constant 1.000000e+00 : f32
    %580 = vector.broadcast %cst_162 : f32 to vector<8x32xf32>
    %581 = arith.addf %580, %579 : vector<8x32xf32>
    %582 = arith.divf %580, %581 : vector<8x32xf32>
    %583 = vector.extract_strided_slice %562 {offsets = [0, 64], sizes = [8, 32], strides = [1, 1]} : vector<8x128xf32> to vector<8x32xf32>
    %584 = vector.extract_strided_slice %566 {offsets = [0, 64], sizes = [8, 32], strides = [1, 1]} : vector<8x128xf32> to vector<8x32xf32>
    %585 = arith.mulf %574, %584 : vector<8x32xf32>
    %586 = arith.addf %583, %585 : vector<8x32xf32>
    %587 = math.tanh %586 : vector<8x32xf32>
    %cst_163 = arith.constant 1.000000e+00 : f32
    %588 = vector.broadcast %cst_163 : f32 to vector<8x32xf32>
    %589 = arith.subf %588, %582 : vector<8x32xf32>
    %590 = arith.mulf %589, %587 : vector<8x32xf32>
    %591 = arith.mulf %582, %558 : vector<8x32xf32>
    %592 = arith.addf %590, %591 : vector<8x32xf32>
    %593 = vector.broadcast %559 : i32 to vector<8x1xi32>
    %594 = arith.cmpi sgt, %18, %593 : vector<8x1xi32>
    %595 = arith.extui %594 : vector<8x1xi1> to vector<8x1xi32>
    %596 = arith.sitofp %595 : vector<8x1xi32> to vector<8x1xf32>
    %597 = vector.broadcast %596 : vector<8x1xf32> to vector<8x32xf32>
    %598 = arith.mulf %597, %592 : vector<8x32xf32>
    %c1_164 = arith.constant 1 : index
    %599 = arith.index_cast %559 : i32 to index
    %c0_165 = arith.constant 0 : index
    %c0_166 = arith.constant 0 : index
    %600 = vector.load %arg9[%c1_164, %599, %c0_165, %c0_166] : memref<2x8x8x32xf32, #tpu.memory_space<vmem>>, vector<1x1x8x32xf32>
    %601 = vector.shape_cast %600 : vector<1x1x8x32xf32> to vector<8x32xf32>
    %602 = vector.shape_cast %598 : vector<8x32xf32> to vector<1x1x8x32xf32>
    tpu.vector_store %arg9[%c1_164, %599, %c0_165, %c0_166], %602 {strides = array<i32>} : memref<2x8x8x32xf32, #tpu.memory_space<vmem>>, vector<1x1x8x32xf32>,
    %cst_167 = arith.constant 1.000000e+00 : f32
    %603 = vector.broadcast %cst_167 : f32 to vector<8x1xf32>
    %604 = arith.subf %603, %596 : vector<8x1xf32>
    %605 = vector.broadcast %604 : vector<8x1xf32> to vector<8x32xf32>
    %606 = arith.mulf %605, %558 : vector<8x32xf32>
    %607 = arith.addf %598, %606 : vector<8x32xf32>
    %c4_i32_168 = arith.constant 4 : i32
    %c7_i32_169 = arith.constant 7 : i32
    %608 = arith.subi %c7_i32_169, %c4_i32_168 : i32
    %c1_170 = arith.constant 1 : index
    %609 = arith.index_cast %608 : i32 to index
    %c0_171 = arith.constant 0 : index
    %c0_172 = arith.constant 0 : index
    %610 = vector.load %arg11[%c1_170, %609, %c0_171, %c0_172] : memref<2x8x8x128xf32, #tpu.memory_space<vmem>>, vector<1x1x8x128xf32>
    %611 = vector.shape_cast %610 : vector<1x1x8x128xf32> to vector<8x128xf32>
    %612 = arith.truncf %607 : vector<8x32xf32> to vector<8x32xbf16>
    %cst_173 = arith.constant dense<0.000000e+00> : vector<8x128xf32>
    %613 = tpu.matmul %612, %20, %cst_173 {dimension_numbers = #tpu.dot_dimension_numbers<[1], [0], [0], [1], [0, 0, 1, 1], [], []>} : vector<8x32xbf16>, vector<32x128xbf16>, vector<8x128xf32> -> vector<8x128xf32>
    %614 = vector.broadcast %22 : vector<1x128xf32> to vector<8x128xf32>
    %615 = arith.addf %613, %614 : vector<8x128xf32>
    %616 = vector.extract_strided_slice %611 {offsets = [0, 0], sizes = [8, 32], strides = [1, 1]} : vector<8x128xf32> to vector<8x32xf32>
    %617 = vector.extract_strided_slice %615 {offsets = [0, 0], sizes = [8, 32], strides = [1, 1]} : vector<8x128xf32> to vector<8x32xf32>
    %618 = arith.addf %616, %617 : vector<8x32xf32>
    %619 = arith.negf %618 : vector<8x32xf32>
    %620 = math.exp %619 : vector<8x32xf32>
    %cst_174 = arith.constant 1.000000e+00 : f32
    %621 = vector.broadcast %cst_174 : f32 to vector<8x32xf32>
    %622 = arith.addf %621, %620 : vector<8x32xf32>
    %623 = arith.divf %621, %622 : vector<8x32xf32>
    %624 = vector.extract_strided_slice %611 {offsets = [0, 32], sizes = [8, 32], strides = [1, 1]} : vector<8x128xf32> to vector<8x32xf32>
    %625 = vector.extract_strided_slice %615 {offsets = [0, 32], sizes = [8, 32], strides = [1, 1]} : vector<8x128xf32> to vector<8x32xf32>
    %626 = arith.addf %624, %625 : vector<8x32xf32>
    %627 = arith.negf %626 : vector<8x32xf32>
    %628 = math.exp %627 : vector<8x32xf32>
    %cst_175 = arith.constant 1.000000e+00 : f32
    %629 = vector.broadcast %cst_175 : f32 to vector<8x32xf32>
    %630 = arith.addf %629, %628 : vector<8x32xf32>
    %631 = arith.divf %629, %630 : vector<8x32xf32>
    %632 = vector.extract_strided_slice %611 {offsets = [0, 64], sizes = [8, 32], strides = [1, 1]} : vector<8x128xf32> to vector<8x32xf32>
    %633 = vector.extract_strided_slice %615 {offsets = [0, 64], sizes = [8, 32], strides = [1, 1]} : vector<8x128xf32> to vector<8x32xf32>
    %634 = arith.mulf %623, %633 : vector<8x32xf32>
    %635 = arith.addf %632, %634 : vector<8x32xf32>
    %636 = math.tanh %635 : vector<8x32xf32>
    %cst_176 = arith.constant 1.000000e+00 : f32
    %637 = vector.broadcast %cst_176 : f32 to vector<8x32xf32>
    %638 = arith.subf %637, %631 : vector<8x32xf32>
    %639 = arith.mulf %638, %636 : vector<8x32xf32>
    %640 = arith.mulf %631, %607 : vector<8x32xf32>
    %641 = arith.addf %639, %640 : vector<8x32xf32>
    %642 = vector.broadcast %608 : i32 to vector<8x1xi32>
    %643 = arith.cmpi sgt, %18, %642 : vector<8x1xi32>
    %644 = arith.extui %643 : vector<8x1xi1> to vector<8x1xi32>
    %645 = arith.sitofp %644 : vector<8x1xi32> to vector<8x1xf32>
    %646 = vector.broadcast %645 : vector<8x1xf32> to vector<8x32xf32>
    %647 = arith.mulf %646, %641 : vector<8x32xf32>
    %c1_177 = arith.constant 1 : index
    %648 = arith.index_cast %608 : i32 to index
    %c0_178 = arith.constant 0 : index
    %c0_179 = arith.constant 0 : index
    %649 = vector.load %arg9[%c1_177, %648, %c0_178, %c0_179] : memref<2x8x8x32xf32, #tpu.memory_space<vmem>>, vector<1x1x8x32xf32>
    %650 = vector.shape_cast %649 : vector<1x1x8x32xf32> to vector<8x32xf32>
    %651 = vector.shape_cast %647 : vector<8x32xf32> to vector<1x1x8x32xf32>
    tpu.vector_store %arg9[%c1_177, %648, %c0_178, %c0_179], %651 {strides = array<i32>} : memref<2x8x8x32xf32, #tpu.memory_space<vmem>>, vector<1x1x8x32xf32>,
    %cst_180 = arith.constant 1.000000e+00 : f32
    %652 = vector.broadcast %cst_180 : f32 to vector<8x1xf32>
    %653 = arith.subf %652, %645 : vector<8x1xf32>
    %654 = vector.broadcast %653 : vector<8x1xf32> to vector<8x32xf32>
    %655 = arith.mulf %654, %607 : vector<8x32xf32>
    %656 = arith.addf %647, %655 : vector<8x32xf32>
    %c5_i32_181 = arith.constant 5 : i32
    %c7_i32_182 = arith.constant 7 : i32
    %657 = arith.subi %c7_i32_182, %c5_i32_181 : i32
    %c1_183 = arith.constant 1 : index
    %658 = arith.index_cast %657 : i32 to index
    %c0_184 = arith.constant 0 : index
    %c0_185 = arith.constant 0 : index
    %659 = vector.load %arg11[%c1_183, %658, %c0_184, %c0_185] : memref<2x8x8x128xf32, #tpu.memory_space<vmem>>, vector<1x1x8x128xf32>
    %660 = vector.shape_cast %659 : vector<1x1x8x128xf32> to vector<8x128xf32>
    %661 = arith.truncf %656 : vector<8x32xf32> to vector<8x32xbf16>
    %cst_186 = arith.constant dense<0.000000e+00> : vector<8x128xf32>
    %662 = tpu.matmul %661, %20, %cst_186 {dimension_numbers = #tpu.dot_dimension_numbers<[1], [0], [0], [1], [0, 0, 1, 1], [], []>} : vector<8x32xbf16>, vector<32x128xbf16>, vector<8x128xf32> -> vector<8x128xf32>
    %663 = vector.broadcast %22 : vector<1x128xf32> to vector<8x128xf32>
    %664 = arith.addf %662, %663 : vector<8x128xf32>
    %665 = vector.extract_strided_slice %660 {offsets = [0, 0], sizes = [8, 32], strides = [1, 1]} : vector<8x128xf32> to vector<8x32xf32>
    %666 = vector.extract_strided_slice %664 {offsets = [0, 0], sizes = [8, 32], strides = [1, 1]} : vector<8x128xf32> to vector<8x32xf32>
    %667 = arith.addf %665, %666 : vector<8x32xf32>
    %668 = arith.negf %667 : vector<8x32xf32>
    %669 = math.exp %668 : vector<8x32xf32>
    %cst_187 = arith.constant 1.000000e+00 : f32
    %670 = vector.broadcast %cst_187 : f32 to vector<8x32xf32>
    %671 = arith.addf %670, %669 : vector<8x32xf32>
    %672 = arith.divf %670, %671 : vector<8x32xf32>
    %673 = vector.extract_strided_slice %660 {offsets = [0, 32], sizes = [8, 32], strides = [1, 1]} : vector<8x128xf32> to vector<8x32xf32>
    %674 = vector.extract_strided_slice %664 {offsets = [0, 32], sizes = [8, 32], strides = [1, 1]} : vector<8x128xf32> to vector<8x32xf32>
    %675 = arith.addf %673, %674 : vector<8x32xf32>
    %676 = arith.negf %675 : vector<8x32xf32>
    %677 = math.exp %676 : vector<8x32xf32>
    %cst_188 = arith.constant 1.000000e+00 : f32
    %678 = vector.broadcast %cst_188 : f32 to vector<8x32xf32>
    %679 = arith.addf %678, %677 : vector<8x32xf32>
    %680 = arith.divf %678, %679 : vector<8x32xf32>
    %681 = vector.extract_strided_slice %660 {offsets = [0, 64], sizes = [8, 32], strides = [1, 1]} : vector<8x128xf32> to vector<8x32xf32>
    %682 = vector.extract_strided_slice %664 {offsets = [0, 64], sizes = [8, 32], strides = [1, 1]} : vector<8x128xf32> to vector<8x32xf32>
    %683 = arith.mulf %672, %682 : vector<8x32xf32>
    %684 = arith.addf %681, %683 : vector<8x32xf32>
    %685 = math.tanh %684 : vector<8x32xf32>
    %cst_189 = arith.constant 1.000000e+00 : f32
    %686 = vector.broadcast %cst_189 : f32 to vector<8x32xf32>
    %687 = arith.subf %686, %680 : vector<8x32xf32>
    %688 = arith.mulf %687, %685 : vector<8x32xf32>
    %689 = arith.mulf %680, %656 : vector<8x32xf32>
    %690 = arith.addf %688, %689 : vector<8x32xf32>
    %691 = vector.broadcast %657 : i32 to vector<8x1xi32>
    %692 = arith.cmpi sgt, %18, %691 : vector<8x1xi32>
    %693 = arith.extui %692 : vector<8x1xi1> to vector<8x1xi32>
    %694 = arith.sitofp %693 : vector<8x1xi32> to vector<8x1xf32>
    %695 = vector.broadcast %694 : vector<8x1xf32> to vector<8x32xf32>
    %696 = arith.mulf %695, %690 : vector<8x32xf32>
    %c1_190 = arith.constant 1 : index
    %697 = arith.index_cast %657 : i32 to index
    %c0_191 = arith.constant 0 : index
    %c0_192 = arith.constant 0 : index
    %698 = vector.load %arg9[%c1_190, %697, %c0_191, %c0_192] : memref<2x8x8x32xf32, #tpu.memory_space<vmem>>, vector<1x1x8x32xf32>
    %699 = vector.shape_cast %698 : vector<1x1x8x32xf32> to vector<8x32xf32>
    %700 = vector.shape_cast %696 : vector<8x32xf32> to vector<1x1x8x32xf32>
    tpu.vector_store %arg9[%c1_190, %697, %c0_191, %c0_192], %700 {strides = array<i32>} : memref<2x8x8x32xf32, #tpu.memory_space<vmem>>, vector<1x1x8x32xf32>,
    %cst_193 = arith.constant 1.000000e+00 : f32
    %701 = vector.broadcast %cst_193 : f32 to vector<8x1xf32>
    %702 = arith.subf %701, %694 : vector<8x1xf32>
    %703 = vector.broadcast %702 : vector<8x1xf32> to vector<8x32xf32>
    %704 = arith.mulf %703, %656 : vector<8x32xf32>
    %705 = arith.addf %696, %704 : vector<8x32xf32>
    %c6_i32_194 = arith.constant 6 : i32
    %c7_i32_195 = arith.constant 7 : i32
    %706 = arith.subi %c7_i32_195, %c6_i32_194 : i32
    %c1_196 = arith.constant 1 : index
    %707 = arith.index_cast %706 : i32 to index
    %c0_197 = arith.constant 0 : index
    %c0_198 = arith.constant 0 : index
    %708 = vector.load %arg11[%c1_196, %707, %c0_197, %c0_198] : memref<2x8x8x128xf32, #tpu.memory_space<vmem>>, vector<1x1x8x128xf32>
    %709 = vector.shape_cast %708 : vector<1x1x8x128xf32> to vector<8x128xf32>
    %710 = arith.truncf %705 : vector<8x32xf32> to vector<8x32xbf16>
    %cst_199 = arith.constant dense<0.000000e+00> : vector<8x128xf32>
    %711 = tpu.matmul %710, %20, %cst_199 {dimension_numbers = #tpu.dot_dimension_numbers<[1], [0], [0], [1], [0, 0, 1, 1], [], []>} : vector<8x32xbf16>, vector<32x128xbf16>, vector<8x128xf32> -> vector<8x128xf32>
    %712 = vector.broadcast %22 : vector<1x128xf32> to vector<8x128xf32>
    %713 = arith.addf %711, %712 : vector<8x128xf32>
    %714 = vector.extract_strided_slice %709 {offsets = [0, 0], sizes = [8, 32], strides = [1, 1]} : vector<8x128xf32> to vector<8x32xf32>
    %715 = vector.extract_strided_slice %713 {offsets = [0, 0], sizes = [8, 32], strides = [1, 1]} : vector<8x128xf32> to vector<8x32xf32>
    %716 = arith.addf %714, %715 : vector<8x32xf32>
    %717 = arith.negf %716 : vector<8x32xf32>
    %718 = math.exp %717 : vector<8x32xf32>
    %cst_200 = arith.constant 1.000000e+00 : f32
    %719 = vector.broadcast %cst_200 : f32 to vector<8x32xf32>
    %720 = arith.addf %719, %718 : vector<8x32xf32>
    %721 = arith.divf %719, %720 : vector<8x32xf32>
    %722 = vector.extract_strided_slice %709 {offsets = [0, 32], sizes = [8, 32], strides = [1, 1]} : vector<8x128xf32> to vector<8x32xf32>
    %723 = vector.extract_strided_slice %713 {offsets = [0, 32], sizes = [8, 32], strides = [1, 1]} : vector<8x128xf32> to vector<8x32xf32>
    %724 = arith.addf %722, %723 : vector<8x32xf32>
    %725 = arith.negf %724 : vector<8x32xf32>
    %726 = math.exp %725 : vector<8x32xf32>
    %cst_201 = arith.constant 1.000000e+00 : f32
    %727 = vector.broadcast %cst_201 : f32 to vector<8x32xf32>
    %728 = arith.addf %727, %726 : vector<8x32xf32>
    %729 = arith.divf %727, %728 : vector<8x32xf32>
    %730 = vector.extract_strided_slice %709 {offsets = [0, 64], sizes = [8, 32], strides = [1, 1]} : vector<8x128xf32> to vector<8x32xf32>
    %731 = vector.extract_strided_slice %713 {offsets = [0, 64], sizes = [8, 32], strides = [1, 1]} : vector<8x128xf32> to vector<8x32xf32>
    %732 = arith.mulf %721, %731 : vector<8x32xf32>
    %733 = arith.addf %730, %732 : vector<8x32xf32>
    %734 = math.tanh %733 : vector<8x32xf32>
    %cst_202 = arith.constant 1.000000e+00 : f32
    %735 = vector.broadcast %cst_202 : f32 to vector<8x32xf32>
    %736 = arith.subf %735, %729 : vector<8x32xf32>
    %737 = arith.mulf %736, %734 : vector<8x32xf32>
    %738 = arith.mulf %729, %705 : vector<8x32xf32>
    %739 = arith.addf %737, %738 : vector<8x32xf32>
    %740 = vector.broadcast %706 : i32 to vector<8x1xi32>
    %741 = arith.cmpi sgt, %18, %740 : vector<8x1xi32>
    %742 = arith.extui %741 : vector<8x1xi1> to vector<8x1xi32>
    %743 = arith.sitofp %742 : vector<8x1xi32> to vector<8x1xf32>
    %744 = vector.broadcast %743 : vector<8x1xf32> to vector<8x32xf32>
    %745 = arith.mulf %744, %739 : vector<8x32xf32>
    %c1_203 = arith.constant 1 : index
    %746 = arith.index_cast %706 : i32 to index
    %c0_204 = arith.constant 0 : index
    %c0_205 = arith.constant 0 : index
    %747 = vector.load %arg9[%c1_203, %746, %c0_204, %c0_205] : memref<2x8x8x32xf32, #tpu.memory_space<vmem>>, vector<1x1x8x32xf32>
    %748 = vector.shape_cast %747 : vector<1x1x8x32xf32> to vector<8x32xf32>
    %749 = vector.shape_cast %745 : vector<8x32xf32> to vector<1x1x8x32xf32>
    tpu.vector_store %arg9[%c1_203, %746, %c0_204, %c0_205], %749 {strides = array<i32>} : memref<2x8x8x32xf32, #tpu.memory_space<vmem>>, vector<1x1x8x32xf32>,
    %cst_206 = arith.constant 1.000000e+00 : f32
    %750 = vector.broadcast %cst_206 : f32 to vector<8x1xf32>
    %751 = arith.subf %750, %743 : vector<8x1xf32>
    %752 = vector.broadcast %751 : vector<8x1xf32> to vector<8x32xf32>
    %753 = arith.mulf %752, %705 : vector<8x32xf32>
    %754 = arith.addf %745, %753 : vector<8x32xf32>
    %c7_i32_207 = arith.constant 7 : i32
    %c7_i32_208 = arith.constant 7 : i32
    %755 = arith.subi %c7_i32_208, %c7_i32_207 : i32
    %c1_209 = arith.constant 1 : index
    %756 = arith.index_cast %755 : i32 to index
    %c0_210 = arith.constant 0 : index
    %c0_211 = arith.constant 0 : index
    %757 = vector.load %arg11[%c1_209, %756, %c0_210, %c0_211] : memref<2x8x8x128xf32, #tpu.memory_space<vmem>>, vector<1x1x8x128xf32>
    %758 = vector.shape_cast %757 : vector<1x1x8x128xf32> to vector<8x128xf32>
    %759 = arith.truncf %754 : vector<8x32xf32> to vector<8x32xbf16>
    %cst_212 = arith.constant dense<0.000000e+00> : vector<8x128xf32>
    %760 = tpu.matmul %759, %20, %cst_212 {dimension_numbers = #tpu.dot_dimension_numbers<[1], [0], [0], [1], [0, 0, 1, 1], [], []>} : vector<8x32xbf16>, vector<32x128xbf16>, vector<8x128xf32> -> vector<8x128xf32>
    %761 = vector.broadcast %22 : vector<1x128xf32> to vector<8x128xf32>
    %762 = arith.addf %760, %761 : vector<8x128xf32>
    %763 = vector.extract_strided_slice %758 {offsets = [0, 0], sizes = [8, 32], strides = [1, 1]} : vector<8x128xf32> to vector<8x32xf32>
    %764 = vector.extract_strided_slice %762 {offsets = [0, 0], sizes = [8, 32], strides = [1, 1]} : vector<8x128xf32> to vector<8x32xf32>
    %765 = arith.addf %763, %764 : vector<8x32xf32>
    %766 = arith.negf %765 : vector<8x32xf32>
    %767 = math.exp %766 : vector<8x32xf32>
    %cst_213 = arith.constant 1.000000e+00 : f32
    %768 = vector.broadcast %cst_213 : f32 to vector<8x32xf32>
    %769 = arith.addf %768, %767 : vector<8x32xf32>
    %770 = arith.divf %768, %769 : vector<8x32xf32>
    %771 = vector.extract_strided_slice %758 {offsets = [0, 32], sizes = [8, 32], strides = [1, 1]} : vector<8x128xf32> to vector<8x32xf32>
    %772 = vector.extract_strided_slice %762 {offsets = [0, 32], sizes = [8, 32], strides = [1, 1]} : vector<8x128xf32> to vector<8x32xf32>
    %773 = arith.addf %771, %772 : vector<8x32xf32>
    %774 = arith.negf %773 : vector<8x32xf32>
    %775 = math.exp %774 : vector<8x32xf32>
    %cst_214 = arith.constant 1.000000e+00 : f32
    %776 = vector.broadcast %cst_214 : f32 to vector<8x32xf32>
    %777 = arith.addf %776, %775 : vector<8x32xf32>
    %778 = arith.divf %776, %777 : vector<8x32xf32>
    %779 = vector.extract_strided_slice %758 {offsets = [0, 64], sizes = [8, 32], strides = [1, 1]} : vector<8x128xf32> to vector<8x32xf32>
    %780 = vector.extract_strided_slice %762 {offsets = [0, 64], sizes = [8, 32], strides = [1, 1]} : vector<8x128xf32> to vector<8x32xf32>
    %781 = arith.mulf %770, %780 : vector<8x32xf32>
    %782 = arith.addf %779, %781 : vector<8x32xf32>
    %783 = math.tanh %782 : vector<8x32xf32>
    %cst_215 = arith.constant 1.000000e+00 : f32
    %784 = vector.broadcast %cst_215 : f32 to vector<8x32xf32>
    %785 = arith.subf %784, %778 : vector<8x32xf32>
    %786 = arith.mulf %785, %783 : vector<8x32xf32>
    %787 = arith.mulf %778, %754 : vector<8x32xf32>
    %788 = arith.addf %786, %787 : vector<8x32xf32>
    %789 = vector.broadcast %755 : i32 to vector<8x1xi32>
    %790 = arith.cmpi sgt, %18, %789 : vector<8x1xi32>
    %791 = arith.extui %790 : vector<8x1xi1> to vector<8x1xi32>
    %792 = arith.sitofp %791 : vector<8x1xi32> to vector<8x1xf32>
    %793 = vector.broadcast %792 : vector<8x1xf32> to vector<8x32xf32>
    %794 = arith.mulf %793, %788 : vector<8x32xf32>
    %c1_216 = arith.constant 1 : index
    %795 = arith.index_cast %755 : i32 to index
    %c0_217 = arith.constant 0 : index
    %c0_218 = arith.constant 0 : index
    %796 = vector.load %arg9[%c1_216, %795, %c0_217, %c0_218] : memref<2x8x8x32xf32, #tpu.memory_space<vmem>>, vector<1x1x8x32xf32>
    %797 = vector.shape_cast %796 : vector<1x1x8x32xf32> to vector<8x32xf32>
    %798 = vector.shape_cast %794 : vector<8x32xf32> to vector<1x1x8x32xf32>
    tpu.vector_store %arg9[%c1_216, %795, %c0_217, %c0_218], %798 {strides = array<i32>} : memref<2x8x8x32xf32, #tpu.memory_space<vmem>>, vector<1x1x8x32xf32>,
    %cst_219 = arith.constant 1.000000e+00 : f32
    %799 = vector.broadcast %cst_219 : f32 to vector<8x1xf32>
    %800 = arith.subf %799, %792 : vector<8x1xf32>
    %801 = vector.broadcast %800 : vector<8x1xf32> to vector<8x32xf32>
    %802 = arith.mulf %801, %754 : vector<8x32xf32>
    %803 = arith.addf %794, %802 : vector<8x32xf32>
    %c8_i32_220 = arith.constant 8 : i32
    %c1_221 = arith.constant 1 : index
    %c0_222 = arith.constant 0 : index
    %c0_223 = arith.constant 0 : index
    %804 = vector.load %arg10[%c1_221, %c0_222, %c0_223] : memref<2x8x32xf32, #tpu.memory_space<vmem>>, vector<1x8x32xf32>
    %805 = vector.shape_cast %804 : vector<1x8x32xf32> to vector<8x32xf32>
    %806 = vector.shape_cast %803 : vector<8x32xf32> to vector<1x8x32xf32>
    tpu.vector_store %arg10[%c1_221, %c0_222, %c0_223], %806 {strides = array<i32>} : memref<2x8x32xf32, #tpu.memory_space<vmem>>, vector<1x8x32xf32>,
    return
  }
  func.func @transform_0(%arg0: i32) -> (i32, i32, i32) {
    %c0_i32 = arith.constant 0 : i32
    %c0_i32_0 = arith.constant 0 : i32
    %c0_i32_1 = arith.constant 0 : i32
    return %c0_i32, %arg0, %c0_i32_0 : i32, i32, i32
  }
  func.func @transform_1(%arg0: i32) -> (i32, i32) {
    %c0_i32 = arith.constant 0 : i32
    %c0_i32_0 = arith.constant 0 : i32
    return %arg0, %c0_i32 : i32, i32
  }
  func.func @transform_2(%arg0: i32) -> (i32, i32) {
    %c0_i32 = arith.constant 0 : i32
    %c0_i32_0 = arith.constant 0 : i32
    %c0_i32_1 = arith.constant 0 : i32
    return %c0_i32, %c0_i32_0 : i32, i32
  }
  func.func @transform_3(%arg0: i32) -> (i32, i32) {
    %c0_i32 = arith.constant 0 : i32
    %c0_i32_0 = arith.constant 0 : i32
    %c0_i32_1 = arith.constant 0 : i32
    return %c0_i32, %c0_i32_0 : i32, i32
  }
  func.func @transform_4(%arg0: i32) -> (i32, i32) {
    %c0_i32 = arith.constant 0 : i32
    %c0_i32_0 = arith.constant 0 : i32
    %c0_i32_1 = arith.constant 0 : i32
    return %c0_i32, %c0_i32_0 : i32, i32
  }
  func.func @transform_5(%arg0: i32) -> (i32, i32) {
    %c0_i32 = arith.constant 0 : i32
    %c0_i32_0 = arith.constant 0 : i32
    %c0_i32_1 = arith.constant 0 : i32
    return %c0_i32, %c0_i32_0 : i32, i32
  }
  func.func @transform_6(%arg0: i32) -> (i32, i32) {
    %c0_i32 = arith.constant 0 : i32
    %c0_i32_0 = arith.constant 0 : i32
    %c0_i32_1 = arith.constant 0 : i32
    return %c0_i32, %c0_i32_0 : i32, i32
  }
  func.func @transform_7(%arg0: i32) -> (i32, i32) {
    %c0_i32 = arith.constant 0 : i32
    %c0_i32_0 = arith.constant 0 : i32
    %c0_i32_1 = arith.constant 0 : i32
    return %c0_i32, %c0_i32_0 : i32, i32
  }
  func.func @transform_8(%arg0: i32) -> (i32, i32, i32, i32) {
    %c0_i32 = arith.constant 0 : i32
    %c0_i32_0 = arith.constant 0 : i32
    %c0_i32_1 = arith.constant 0 : i32
    %c0_i32_2 = arith.constant 0 : i32
    return %c0_i32, %c0_i32_0, %arg0, %c0_i32_1 : i32, i32, i32, i32
  }
  func.func @transform_9(%arg0: i32) -> (i32, i32, i32) {
    %c0_i32 = arith.constant 0 : i32
    %c0_i32_0 = arith.constant 0 : i32
    %c0_i32_1 = arith.constant 0 : i32
    return %c0_i32, %arg0, %c0_i32_0 : i32, i32, i32
  }
}

</mosaic_0001>

<bundles_post_ra>
// kernel: tpu_custom_call.1
= control target key start
LH: loop header
LB: loop body
LE: loop exit
PB: predicated region body
PF: predicated region fallthrough
CT: control target
= control target key end

     0   :  { %15 = vsyncpa [#allocation4], 0  ;;  %s2845_s0 = inlined_call_operand.hbm [shape: f32[8,8,16], index: 0, kind: input, shape index: {}]   ;;  %s2846_s1 = inlined_call_operand.vmem [shape: s32[8,1], index: 1, kind: input, shape index: {}]   ;;  %s2847_s2 = inlined_call_operand.vmem [shape: bf16[16,256], index: 2, kind: input, shape index: {}]   ;;  %s2848_s3 = inlined_call_operand.vmem [shape: f32[1,256], index: 3, kind: input, shape index: {}]   ;;  %s2849_s4 = inlined_call_operand.hbm [shape: bf16[32,128], index: 4, kind: input, shape index: {}]   ;;  %s2850_s5 = inlined_call_operand.vmem [shape: f32[1,128], index: 5, kind: input, shape index: {}]   ;;  %s2851_s6 = inlined_call_operand.hbm [shape: bf16[32,128], index: 6, kind: input, shape index: {}]   ;;  %s2852_s7 = inlined_call_operand.vmem [shape: f32[1,128], index: 7, kind: input, shape index: {}]   ;;  %s2853_s8 = inlined_call_operand.hbm [shape: f32[2,8,8,32], index: 8, kind: output, shape index: {0}]   ;;  %s2854_s9 = inlined_call_operand.hbm [shape: f32[2,8,32], index: 9, kind: output, shape index: {1}]  }
   0x1   :  { %16 = vsyncpa [#allocation7], 0 }
   0x2   :  { %17 = vsyncpa [#allocation5], 0 }
   0x3   :  { %18 = vsyncpa [#allocation11], 0  ;;  %s2212_s30 = smov [#allocation6]   ;;  %s2094_s13 = scalar_lea.hbm %s2849_s4, 256 }
   0x4   :  { %s42_s10 = sshll.u32 %s2212_s30, 4  ;;  %p2095_p0 = scmp.ne.s32.totalorder %s2849_s4, %s2094_s13  ;;  %s43_s10 = int_to_ptr.vmem [resolvable:$true] %s42_s10 }
   0x5   :  { %p2098_p1 = scmp.lt.u32.totalorder %s2094_s13, %s2849_s4 }
   0x7   :  { %p2100_p2 = pnand %p2098_p1, %p2095_p0 }
   0x9   :  { %2103 = shalt.err (!%p2100_p2)
}
   0xa   :  { %s2104_s18 = scalar_lea.vmem %s43_s10, 256  ;;  %p2109_p4 = scmp.lt.s32.totalorder %s43_s10, %s43_s10 }
   0xb   :  { %p2105_p3 = scmp.ne.s32.totalorder %s43_s10, %s2104_s18  ;;  %p2110_p5 = scmp.lt.s32.totalorder %s2104_s18, %s2104_s18 }
   0xd   :  { %p2111_p6 = por %p2110_p5, %p2109_p4 }
   0xf   :  { %p2112_p7 = pnand %p2111_p6, %p2105_p3 }
  0x11   :  { %2115 = shalt.err (!%p2112_p7)
}
  0x12   :  { %s2213_s19 = smov 64   ;;  %s2214_s20 = smov 4  }
  0x13   :  { %48 = dma.hbm_to_vmem [thread:$0]  %s2849_s4, 256, %s43_s10, [#allocation7], %s2213_s19, %s2213_s19, %s2214_s20  }
  0x14   :  { %s2215_s23 = smov [#allocation3]   ;;  %s2116_s27 = scalar_lea.hbm %s2845_s0, 1024 }
  0x15   :  { %s24_s24 = sshll.u32 %s2215_s23, 4  ;;  %p2117_p8 = scmp.ne.s32.totalorder %s2845_s0, %s2116_s27  ;;  %s25_s24 = int_to_ptr.vmem [resolvable:$true] %s24_s24 }
  0x16   :  { %p2120_p9 = scmp.lt.u32.totalorder %s2116_s27, %s2845_s0 }
  0x18   :  { %p2122_p10 = pnand %p2120_p9, %p2117_p8 }
  0x1a   :  { %2125 = shalt.err (!%p2122_p10)
}
  0x1b   :  { %s2126_s12 = scalar_lea.vmem %s25_s24, 1024  ;;  %p2131_p12 = scmp.lt.s32.totalorder %s25_s24, %s25_s24 }
  0x1c   :  { %p2127_p11 = scmp.ne.s32.totalorder %s25_s24, %s2126_s12  ;;  %p2132_p13 = scmp.lt.s32.totalorder %s2126_s12, %s2126_s12 }
  0x1e   :  { %p2133_p0 = por %p2132_p13, %p2131_p12 }
  0x20   :  { %p2134_p1 = pnand %p2133_p0, %p2127_p11 }
  0x22   :  { %2137 = shalt.err (!%p2134_p1)
}
  0x23   :  { %s2216_s4 = smov 128   ;;  %s2217_s10 = smov 8  }
  0x24   :  { %30 = dma.hbm_to_vmem [thread:$0]  %s2845_s0, 1024, %s25_s24, [#allocation4], %s2216_s4, %s2216_s4, %s2217_s10  }
  0x25   :  { %s2218_s15 = smov [#allocation8]   ;;  %s2138_s21 = scalar_lea.hbm %s2851_s6, 256 }
  0x26   :  { %s56_s16 = sshll.u32 %s2218_s15, 4  ;;  %p2139_p2 = scmp.ne.s32.totalorder %s2851_s6, %s2138_s21  ;;  %s57_s16 = int_to_ptr.vmem [resolvable:$true] %s56_s16 }
  0x27   :  { %p2142_p3 = scmp.lt.u32.totalorder %s2138_s21, %s2851_s6 }
  0x29   :  { %p2144_p4 = pnand %p2142_p3, %p2139_p2 }
  0x2b   :  { %2147 = shalt.err (!%p2144_p4)
}
  0x2c   :  { %s2148_s27 = scalar_lea.vmem %s57_s16, 256  ;;  %p2153_p6 = scmp.lt.s32.totalorder %s57_s16, %s57_s16 }
  0x2d   :  { %p2149_p5 = scmp.ne.s32.totalorder %s57_s16, %s2148_s27  ;;  %p2154_p7 = scmp.lt.s32.totalorder %s2148_s27, %s2148_s27 }
  0x2f   :  { %p2155_p8 = por %p2154_p7, %p2153_p6 }
  0x31   :  { %p2156_p9 = pnand %p2155_p8, %p2149_p5 }
  0x33   :  { %2159 = shalt.err (!%p2156_p9)
}
  0x34   :  { %62 = dma.hbm_to_vmem [thread:$0]  %s2851_s6, 256, %s57_s16, [#allocation7], %s2213_s19, %s2213_s19, %s2214_s20  }
  0x35   :  { %2204 = dma.done.wait [#allocation4], 1024  }
  0x36   :  { %2205 = vsyncadd [#allocation4], 4294966272 }
  0x37   :  { %2206 = dma.done.wait [#allocation7], 512  }
  0x38   :  { %2207 = vsyncadd [#allocation7], 4294966784  ;;  %v2219_v0 = vmov 0.0   ;;  %v2220_v1 = vmov 0   ;;  %vm2221_vm0 = vmmov 0   ;;  %v2326_v2 = vld [vmem:[#allocation6] sm:$0xff]   ;;  %v91_v22 = vlaneseq }
  0x39   :  { %1847 = vmatprep.subr.bf16.mxu1 %v2219_v0  ;;  %156 = vmatprep.mubr.bf16.mxu0 %v2220_v1  ;;  %v1991_v3 = vld [vmem:[%s2847_s2 + $0x4] ss:$8 sps:$4 sm:$0xff]   ;;  %v1993_v4 = vld [vmem:[%s2847_s2] ss:$8 sps:$4 sm:$0xff]   ;;  %vm111_vm1 = vcmask 130048   ;;  %vm244_vm3 = vcmask 261120  }
  0x3a   :  { %1851 = vmatprep.mubr.msk.bf16.mxu1 %vm2221_vm0, %v2219_v0  ;;  %1988 = vset.pattern.permute.xlu1 %v2220_v1  ;;  %v2336_v5 = vld [vmem:[#allocation6 + $0x8] sm:$0xff]   ;;  %v75_v6 = vld [vmem:[#allocation3] sm:$0xff]  ;;  %v2372_v23 = vshrl.u32 %v91_v22, 7  ;;  %s2224_s17 = smov [#allocation10]  }
  0x3b   :  { %1989 = vset.pattern.permute.xlu0 %v2220_v1  ;;  %1848 = vmatpush3.bf16.msra.mxu1 %v2326_v2  ;;  %v76_v7 = vld [vmem:[#allocation3 + $0x8] sm:$0xff]  ;;  %v2357_v9 = vld [vmem:[%s2846_s1] sm:$0xff]  ;;  %s1732_s18 = sshll.u32 %s2224_s17, 4  ;;  %s2807_s18 = int_to_ptr.vmem [resolvable:$true] %s1732_s18 }
  0x3c   :  { %124 = vmatprep.subr.bf16.mxu0 %v1991_v3  ;;  %1849 = vmatprep.subr.bf16.mxu1 %v2219_v0  ;;  %v83_v8 = vpack.c.bf16 %v76_v7, %v75_v6  ;;  %vm314_vm2 = vcmp.gt.s32.totalorder %v2357_v9, 0  ;;  %v2364_v13 = vld [vmem:[%s2850_s5] ss:$0 sm:$0xff]  ;;  %v93_v24 = vsub.s32 0, %v2372_v23  ;;  %vm411_vm4 = vcmp.gt.s32.totalorder %v2357_v9, 1 }
  0x3d   :  { %125 = vmatpush1.bf16.msra.mxu0 %v1993_v4  ;;  %v1759_v10 = vsel %vm314_vm2, 1.0, %v2219_v0  ;;  %v2378_v25 = vld [vmem:[%s2848_s3] sm:$0x3]  ;;  %s2222_s3 = smov 96   ;;  %v1762_v55 = vsel %vm411_vm4, 1.0, %v2219_v0  ;;  %vm509_vm5 = vcmp.gt.s32.totalorder %v2357_v9, 2 }
  0x3e   :  { %1879 = vmatprep.subr.bf16.mxu0 %v2219_v0  ;;  %319 = vperm.xlu1 %1988, %v1759_v10   ;;  %v328_v11 = vsub.f32 1.0, %v1759_v10  ;;  %v2381_v26 = vrot.slane %v2378_v25, %v93_v24  ;;  %v426_v3 = vsub.f32 1.0, %v1762_v55  ;;  %v78_v10 = vld [vmem:[#allocation3 + $0x18] sm:$0xff]  ;;  %vm607_vm6 = vcmp.gt.s32.totalorder %v2357_v9, 3 }
  0x3f   :  { %1850 = vmatpush3.bf16.msra.mxu1 %v2336_v5  ;;  %vm705_vm7 = vcmp.gt.s32.totalorder %v2357_v9, 4  ;;  %vm803_vm8 = vcmp.gt.s32.totalorder %v2357_v9, 5  ;;  %vm901_vm9 = vcmp.gt.s32.totalorder %v2357_v9, 6  ;;  %vm999_vm10 = vcmp.gt.s32.totalorder %v2357_v9, 7 }
  0x40   :  { %1751 = vmatmul.mubr.msk.bf16.vlgmr.msra.gmra.mrb[0].mxu0 %vm111_vm1, %v83_v8  ;;  %1855 = vmatprep.subr.bf16.mxu1 %v2219_v0  ;;  %v77_v8 = vld [vmem:[#allocation3 + $0x10] sm:$0xff] }
  0x41   :  { %166 = vmatprep.mubr.bf16.mxu0 %v2220_v1  ;;  %1880 = vmatpush3.bf16.msra.mxu0 %v2326_v2 }
  0x42   :  { %1852 = vmatmul.mubr.bf16.vlgmr.msra.gmra.mrb[0].mxu1 %v2220_v1  ;;  %1881 = vmatprep.subr.bf16.mxu0 %v2219_v0 }
  0x43   :  { %1856 = vmatpush3.bf16.msra.mxu1 %v2326_v2  ;;  %1859 = vmatprep.mubr.msk.bf16.mxu1 %vm2221_vm0, %v2219_v0 }
  0x44   :  { %1857 = vmatprep.subr.bf16.mxu1 %v2219_v0  ;;  %331 = vperm.xlu1 %1988, %v328_v11  }
  0x45   :  { %1882 = vmatpush3.bf16.msra.mxu0 %v2336_v5 }
  0x46   :  { %1895 = vmatprep.subr.bf16.mxu0 %v2219_v0 }
  0x47   :  { %1858 = vmatpush3.bf16.msra.mxu1 %v2336_v5 }
  0x48   :  { %1863 = vmatprep.subr.bf16.mxu1 %v2219_v0 }
  0xbd   :  { %v2386_v38 = vpop.permute.xlu1 %319 }
  0xc3   :  { %v2388_v43 = vpop.permute.xlu1 %331 }
  0xc4   :  { %v334_v45 = vmul.f32 0.0, %v2388_v43 }
 0x113   :  { %v158_v12 = vpop.f32.mrb[0].mxu0 }
 0x114   :  { %v2366_v14 = vpop.f32.mrb[1].mxu0  ;;  %v159_v27 = vadd.f32 %v158_v12, %v2381_v26  ;;  %v84_v12 = vpack.c.bf16 %v78_v10, %v77_v8 }
 0x115   :  { %v282_v15 = vpop.f32.mrb[0].mxu1  ;;  %v162_v16 = vpop.f32.mrb[2].mxu0 }
 0x116   :  { %v283_v17 = vadd.f32 %v2364_v13, %v282_v15  ;;  %v1853_v18 = vpop.f32.mrb[1].mxu1  ;;  %v2369_v19 = vpop.f32.mrb[3].mxu0  ;;  %v163_v56 = vadd.f32 %v162_v16, %v2381_v26  ;;  %1752 = vmatmul.mubr.msk.bf16.gmra.mrb[4].mxu0 %vm111_vm1, %v84_v12 }
 0x117   :  { %v285_v20 = vpop.f32.mrb[2].mxu1  ;;  %176 = vmatprep.mubr.bf16.mxu0 %v2220_v1 }
 0x118   :  { %296 = vrot.lane.b32.xlu0 %v283_v17, %s2213_s19  ;;  %v1854_v21 = vpop.f32.mrb[3].mxu1  ;;  %v288_v28 = vadd.f32 %v283_v17, %v159_v27 }
 0x11a   :  { %v1758_v29 = vmul.f32 -1.442695, %v288_v28 }
 0x11c   :  { %1997 = vpow2.f32 %v1758_v29 }
 0x126   :  { %v1998_v30 = vpop.eup %1997 }
 0x127   :  { %v292_v31 = vadd.f32 1.0, %v1998_v30 }
 0x129   :  { %1999 = vrcp.f32 %v292_v31 }
 0x133   :  { %v2000_v32 = vpop.eup %1999 }
 0x134   :  { %v306_v39 = vsub.f32 1.0, %v2000_v32  ;;  %v312_v41 = vmul.f32 0.0, %v2000_v32 }
 0x18a   :  { %v297_v33 = vpop.permute.xlu0 %296 }
 0x18b   :  { %v299_v34 = vmul.f32 %v2000_v32, %v297_v33 }
 0x18d   :  { %301 = vrot.lane.b32.xlu0 %v299_v34, %s2213_s19 }
 0x1e9   :  { %v168_v30 = vpop.f32.mrb[4].mxu0 }
 0x1ea   :  { %v2429_v31 = vpop.f32.mrb[5].mxu0 }
 0x1eb   :  { %v172_v32 = vpop.f32.mrb[6].mxu0 }
 0x1ec   :  { %v2431_v33 = vpop.f32.mrb[7].mxu0 }
 0x1ff   :  { %v302_v35 = vpop.permute.xlu0 %301 }
 0x200   :  { %v304_v36 = vadd.f32 %v302_v35, %v159_v27 }
 0x202   :  { %2001 = vtanh.f32 %v304_v36 }
 0x20c   :  { %v2002_v37 = vpop.eup %2001 }
 0x20d   :  { %308 = vrot.lane.b32.xlu0 %v2002_v37, %s2222_s3 }
 0x27f   :  { %v309_v40 = vpop.permute.xlu0 %308 }
 0x280   :  { %v311_v42 = vmul.f32 %v309_v40, %v306_v39  ;;  %v1765_v40 = vsel %vm509_vm5, 1.0, %v2219_v0 }
 0x282   :  { %v313_v44 = vadd.f32 %v312_v41, %v311_v42  ;;  %v169_v41 = vadd.f32 %v168_v30, %v2381_v26 }
 0x284   :  { %v2392_v46 = vmul.f32 %v2386_v38, %v313_v44 }
 0x286   :  { %v335_v47 = vadd.f32 %v334_v45, %v2392_v46 }
 0x288   :  { %v338_v48 = vpack.c.bf16 %v335_v47, %v335_v47 }
 0x28a   :  { %340 = vrot.lane.b32.xlu1 %v338_v48, %s2222_s3 }
 0x2fc   :  { %v341_v49 = vpop.permute.xlu1 %340 }
 0x2fd   :  { %1860 = vmatmul.mubr.msk.bf16.vlgmr.msra.gmra.mrb[4].mxu1 %vm244_vm3, %v341_v49 }
 0x2fe   :  { %1864 = vmatpush3.bf16.msra.mxu1 %v2326_v2  ;;  %1867 = vmatprep.mubr.msk.bf16.mxu1 %vm2221_vm0, %v2219_v0 }
 0x2ff   :  { %1865 = vmatprep.subr.bf16.mxu1 %v2219_v0 }
 0x302   :  { %1866 = vmatpush3.bf16.msra.mxu1 %v2336_v5 }
 0x303   :  { %1871 = vmatprep.subr.bf16.mxu1 %v2219_v0 }
 0x3d0   :  { %v379_v50 = vpop.f32.mrb[4].mxu1 }
 0x3d1   :  { %v380_v51 = vadd.f32 %v2364_v13, %v379_v50  ;;  %v1861_v52 = vpop.f32.mrb[5].mxu1 }
 0x3d2   :  { %v382_v53 = vpop.f32.mrb[6].mxu1 }
 0x3d3   :  { %393 = vrot.lane.b32.xlu0 %v380_v51, %s2213_s19  ;;  %v1862_v54 = vpop.f32.mrb[7].mxu1  ;;  %v385_v57 = vadd.f32 %v380_v51, %v163_v56  ;;  %v524_v51 = vsub.f32 1.0, %v1765_v40 }
 0x3d5   :  { %v1761_v58 = vmul.f32 -1.442695, %v385_v57 }
 0x3d7   :  { %416 = vperm.xlu0 %1989, %v1762_v55   ;;  %2003 = vpow2.f32 %v1761_v58 }
 0x3e1   :  { %v2004_v59 = vpop.eup %2003 }
 0x3e2   :  { %v389_v60 = vadd.f32 1.0, %v2004_v59 }
 0x3e4   :  { %2005 = vrcp.f32 %v389_v60 }
 0x3ee   :  { %v2006_v61 = vpop.eup %2005 }
 0x3ef   :  { %v403_v15 = vsub.f32 1.0, %v2006_v61  ;;  %v409_v17 = vmul.f32 %v2006_v61, %v335_v47 }
 0x445   :  { %v394_v62 = vpop.permute.xlu0 %393 }
 0x446   :  { %v396_v63 = vmul.f32 %v2006_v61, %v394_v62 }
 0x448   :  { %398 = vrot.lane.b32.xlu1 %v396_v63, %s2213_s19 }
 0x44c   :  { %429 = vperm.xlu1 %1988, %v426_v3  }
 0x456   :  { %v2414_v20 = vpop.permute.xlu0 %416 }
 0x4ba   :  { %v399_v4 = vpop.permute.xlu1 %398 }
 0x4bb   :  { %v401_v6 = vadd.f32 %v399_v4, %v163_v56 }
 0x4bd   :  { %2007 = vtanh.f32 %v401_v6 }
 0x4c7   :  { %v2008_v7 = vpop.eup %2007 }
 0x4c8   :  { %405 = vrot.lane.b32.xlu1 %v2008_v7, %s2222_s3 }
 0x4cb   :  { %v2410_v11 = vpop.permute.xlu1 %429 }
 0x4cc   :  { %v432_v22 = vmul.f32 %v2410_v11, %v335_v47 }
 0x53a   :  { %v406_v16 = vpop.permute.xlu1 %405 }
 0x53b   :  { %v408_v18 = vmul.f32 %v406_v16, %v403_v15  ;;  %v1768_v16 = vsel %vm607_vm6, 1.0, %v2219_v0 }
 0x53d   :  { %v410_v21 = vadd.f32 %v409_v17, %v408_v18  ;;  %v173_v17 = vadd.f32 %v172_v32, %v2381_v26 }
 0x53f   :  { %v2418_v24 = vmul.f32 %v2414_v20, %v410_v21 }
 0x541   :  { %v433_v27 = vadd.f32 %v432_v22, %v2418_v24 }
 0x543   :  { %v436_v28 = vpack.c.bf16 %v433_v27, %v433_v27 }
 0x545   :  { %438 = vrot.lane.b32.xlu0 %v436_v28, %s2222_s3 }
 0x5b7   :  { %v439_v29 = vpop.permute.xlu0 %438 }
 0x5b8   :  { %1868 = vmatmul.mubr.msk.bf16.vlgmr.msra.gmra.mrb[8].mxu1 %vm244_vm3, %v439_v29 }
 0x5b9   :  { %1872 = vmatpush3.bf16.msra.mxu1 %v2326_v2  ;;  %1875 = vmatprep.mubr.msk.bf16.mxu1 %vm2221_vm0, %v2219_v0 }
 0x5ba   :  { %1873 = vmatprep.subr.bf16.mxu1 %v2219_v0 }
 0x5bd   :  { %1874 = vmatpush3.bf16.msra.mxu1 %v2336_v5 }
 0x5be   :  { %1887 = vmatprep.subr.bf16.mxu1 %v2219_v0 }
 0x68b   :  { %v477_v34 = vpop.f32.mrb[8].mxu1 }
 0x68c   :  { %v478_v35 = vadd.f32 %v2364_v13, %v477_v34  ;;  %v1869_v36 = vpop.f32.mrb[9].mxu1  ;;  %v622_v34 = vsub.f32 1.0, %v1768_v16 }
 0x68d   :  { %v480_v37 = vpop.f32.mrb[10].mxu1 }
 0x68e   :  { %491 = vrot.lane.b32.xlu1 %v478_v35, %s2213_s19  ;;  %v1870_v39 = vpop.f32.mrb[11].mxu1  ;;  %v483_v42 = vadd.f32 %v478_v35, %v169_v41  ;;  %v79_v37 = vld [vmem:[#allocation3 + $0x20] sm:$0xff] }
 0x68f   :  { %v80_v39 = vld [vmem:[#allocation3 + $0x28] sm:$0xff] }
 0x690   :  { %v1764_v44 = vmul.f32 -1.442695, %v483_v42  ;;  %v82_v42 = vld [vmem:[#allocation3 + $0x38] sm:$0xff] }
 0x692   :  { %514 = vperm.xlu1 %1988, %v1765_v40   ;;  %2009 = vpow2.f32 %v1764_v44  ;;  %v85_v40 = vpack.c.bf16 %v80_v39, %v79_v37 }
 0x694   :  { %1753 = vmatmul.mubr.msk.bf16.gmra.mrb[8].mxu0 %vm111_vm1, %v85_v40 }
 0x695   :  { %186 = vmatprep.mubr.bf16.mxu0 %v2220_v1 }
 0x69c   :  { %v2010_v45 = vpop.eup %2009 }
 0x69d   :  { %v487_v47 = vadd.f32 1.0, %v2010_v45 }
 0x69f   :  { %2011 = vrcp.f32 %v487_v47 }
 0x6a9   :  { %v2012_v48 = vpop.eup %2011 }
 0x6aa   :  { %v501_v56 = vsub.f32 1.0, %v2012_v48  ;;  %v507_v58 = vmul.f32 %v2012_v48, %v433_v27 }
 0x700   :  { %v492_v49 = vpop.permute.xlu1 %491 }
 0x701   :  { %v494_v50 = vmul.f32 %v2012_v48, %v492_v49 }
 0x703   :  { %496 = vrot.lane.b32.xlu0 %v494_v50, %s2213_s19 }
 0x707   :  { %527 = vperm.xlu0 %1989, %v524_v51  }
 0x711   :  { %v2440_v55 = vpop.permute.xlu1 %514 }
 0x775   :  { %v497_v52 = vpop.permute.xlu0 %496 }
 0x776   :  { %v499_v53 = vadd.f32 %v497_v52, %v169_v41  ;;  %v81_v41 = vld [vmem:[#allocation3 + $0x30] sm:$0xff] }
 0x777   :  { %v86_v44 = vpack.c.bf16 %v82_v42, %v81_v41 }
 0x778   :  { %2013 = vtanh.f32 %v499_v53 }
 0x779   :  { %1754 = vmatmul.mubr.msk.bf16.gmra.mrb[12].mxu0 %vm111_vm1, %v86_v44 }
 0x77a   :  { %1883 = vmatprep.mubr.msk.bf16.mxu0 %vm2221_vm0, %v2219_v0 }
 0x782   :  { %v2014_v54 = vpop.eup %2013 }
 0x783   :  { %503 = vrot.lane.b32.xlu1 %v2014_v54, %s2222_s3 }
 0x786   :  { %v2442_v60 = vpop.permute.xlu0 %527 }
 0x787   :  { %v530_v62 = vmul.f32 %v2442_v60, %v433_v27 }
 0x7f5   :  { %v504_v57 = vpop.permute.xlu1 %503 }
 0x7f6   :  { %v506_v59 = vmul.f32 %v504_v57, %v501_v56 }
 0x7f8   :  { %v508_v61 = vadd.f32 %v507_v58, %v506_v59  ;;  %v178_v58 = vpop.f32.mrb[8].mxu0 }
 0x7f9   :  { %v2479_v59 = vpop.f32.mrb[9].mxu0 }
 0x7fa   :  { %v2446_v63 = vmul.f32 %v2440_v55, %v508_v61  ;;  %v2481_v61 = vpop.f32.mrb[10].mxu0 }
 0x7fc   :  { %v531_v3 = vadd.f32 %v530_v62, %v2446_v63  ;;  %v2483_v62 = vpop.f32.mrb[11].mxu0 }
 0x7fe   :  { %v534_v4 = vpack.c.bf16 %v531_v3, %v531_v3 }
 0x800   :  { %536 = vrot.lane.b32.xlu0 %v534_v4, %s2222_s3 }
 0x84c   :  { %v2485_v4 = vpop.f32.mrb[12].mxu0 }
 0x872   :  { %v537_v6 = vpop.permute.xlu0 %536 }
 0x873   :  { %1876 = vmatmul.mubr.msk.bf16.vlgmr.msra.gmra.mrb[12].mxu1 %vm244_vm3, %v537_v6  ;;  %v2487_v6 = vpop.f32.mrb[13].mxu0 }
 0x874   :  { %1888 = vmatpush3.bf16.msra.mxu1 %v2326_v2  ;;  %1891 = vmatprep.mubr.msk.bf16.mxu1 %vm2221_vm0, %v2219_v0 }
 0x875   :  { %1889 = vmatprep.subr.bf16.mxu1 %v2219_v0 }
 0x878   :  { %1890 = vmatpush3.bf16.msra.mxu1 %v2336_v5 }
 0x879   :  { %1903 = vmatprep.subr.bf16.mxu1 %v2219_v0 }
 0x946   :  { %v575_v7 = vpop.f32.mrb[12].mxu1 }
 0x947   :  { %v576_v8 = vadd.f32 %v2364_v13, %v575_v7  ;;  %v1877_v10 = vpop.f32.mrb[13].mxu1 }
 0x948   :  { %v578_v12 = vpop.f32.mrb[14].mxu1 }
 0x949   :  { %589 = vrot.lane.b32.xlu1 %v576_v8, %s2213_s19  ;;  %v1878_v15 = vpop.f32.mrb[15].mxu1  ;;  %v581_v18 = vadd.f32 %v576_v8, %v173_v17 }
 0x94b   :  { %v1767_v21 = vmul.f32 -1.442695, %v581_v18  ;;  %v1771_v18 = vsel %vm705_vm7, 1.0, %v2219_v0 }
 0x94d   :  { %612 = vperm.xlu1 %1988, %v1768_v16   ;;  %2015 = vpow2.f32 %v1767_v21  ;;  %v179_v21 = vadd.f32 %v178_v58, %v2381_v26 }
 0x957   :  { %v2016_v22 = vpop.eup %2015 }
 0x958   :  { %v585_v27 = vadd.f32 1.0, %v2016_v22 }
 0x95a   :  { %2017 = vrcp.f32 %v585_v27 }
 0x964   :  { %v2018_v28 = vpop.eup %2017 }
 0x965   :  { %v599_v47 = vsub.f32 1.0, %v2018_v28  ;;  %v605_v49 = vmul.f32 %v2018_v28, %v531_v3 }
 0x9bb   :  { %v590_v29 = vpop.permute.xlu1 %589 }
 0x9bc   :  { %v592_v30 = vmul.f32 %v2018_v28, %v590_v29 }
 0x9be   :  { %594 = vrot.lane.b32.xlu0 %v592_v30, %s2213_s19 }
 0x9c2   :  { %625 = vperm.xlu0 %1989, %v622_v34  }
 0x9cc   :  { %v2469_v45 = vpop.permute.xlu1 %612 }
 0xa30   :  { %v595_v35 = vpop.permute.xlu0 %594 }
 0xa31   :  { %v597_v36 = vadd.f32 %v595_v35, %v173_v17 }
 0xa33   :  { %2019 = vtanh.f32 %v597_v36  ;;  %v720_v36 = vsub.f32 1.0, %v1771_v18 }
 0xa3d   :  { %v2020_v32 = vpop.eup %2019 }
 0xa3e   :  { %601 = vrot.lane.b32.xlu1 %v2020_v32, %s2222_s3 }
 0xa41   :  { %v2471_v51 = vpop.permute.xlu0 %625 }
 0xa42   :  { %v628_v53 = vmul.f32 %v2471_v51, %v531_v3  ;;  %v2489_v3 = vpop.f32.mrb[14].mxu0 }
 0xa43   :  { %v2491_v7 = vpop.f32.mrb[15].mxu0 }
 0xab0   :  { %v602_v48 = vpop.permute.xlu1 %601 }
 0xab1   :  { %v604_v50 = vmul.f32 %v602_v48, %v599_v47 }
 0xab3   :  { %v606_v52 = vadd.f32 %v605_v49, %v604_v50 }
 0xab5   :  { %v2475_v54 = vmul.f32 %v2469_v45, %v606_v52 }
 0xab7   :  { %v629_v56 = vadd.f32 %v628_v53, %v2475_v54 }
 0xab9   :  { %v632_v57 = vpack.c.bf16 %v629_v56, %v629_v56 }
 0xabb   :  { %634 = vrot.lane.b32.xlu0 %v632_v57, %s2222_s3 }
 0xb2d   :  { %v635_v8 = vpop.permute.xlu0 %634 }
 0xb2e   :  { %1884 = vmatmul.mubr.msk.bf16.vlgmr.msra.gmra.mrb[16].mxu0 %vm244_vm3, %v635_v8 }
 0xb2f   :  { %1896 = vmatpush3.bf16.msra.mxu0 %v2326_v2  ;;  %1899 = vmatprep.mubr.msk.bf16.mxu0 %vm2221_vm0, %v2219_v0 }
 0xb30   :  { %1897 = vmatprep.subr.bf16.mxu0 %v2219_v0 }
 0xb33   :  { %1898 = vmatpush3.bf16.msra.mxu0 %v2336_v5 }
 0xb34   :  { %1911 = vmatprep.subr.bf16.mxu0 %v2219_v0 }
 0xc01   :  { %v673_v10 = vpop.f32.mrb[16].mxu0 }
 0xc02   :  { %v674_v12 = vadd.f32 %v2364_v13, %v673_v10  ;;  %v1885_v15 = vpop.f32.mrb[17].mxu0 }
 0xc03   :  { %v676_v16 = vpop.f32.mrb[18].mxu0 }
 0xc04   :  { %687 = vrot.lane.b32.xlu1 %v674_v12, %s2213_s19  ;;  %v1886_v17 = vpop.f32.mrb[19].mxu0  ;;  %v679_v22 = vadd.f32 %v674_v12, %v179_v21  ;;  %v183_v16 = vadd.f32 %v2481_v61, %v2381_v26 }
 0xc06   :  { %v1770_v27 = vmul.f32 -1.442695, %v679_v22 }
 0xc08   :  { %710 = vperm.xlu1 %1988, %v1771_v18   ;;  %2021 = vpow2.f32 %v1770_v27 }
 0xc12   :  { %v2022_v28 = vpop.eup %2021 }
 0xc13   :  { %v683_v29 = vadd.f32 1.0, %v2022_v28 }
 0xc15   :  { %2023 = vrcp.f32 %v683_v29 }
 0xc1f   :  { %v2024_v30 = vpop.eup %2023 }
 0xc20   :  { %v697_v41 = vsub.f32 1.0, %v2024_v30  ;;  %v703_v44 = vmul.f32 %v2024_v30, %v629_v56 }
 0xc76   :  { %v688_v34 = vpop.permute.xlu1 %687 }
 0xc77   :  { %v690_v35 = vmul.f32 %v2024_v30, %v688_v34 }
 0xc79   :  { %692 = vrot.lane.b32.xlu0 %v690_v35, %s2213_s19 }
 0xc7d   :  { %723 = vperm.xlu0 %1989, %v720_v36  }
 0xc87   :  { %v2507_v32 = vpop.permute.xlu1 %710 }
 0xceb   :  { %v693_v37 = vpop.permute.xlu0 %692 }
 0xcec   :  { %v695_v39 = vadd.f32 %v693_v37, %v179_v21 }
 0xcee   :  { %2025 = vtanh.f32 %v695_v39 }
 0xcf8   :  { %v2026_v40 = vpop.eup %2025 }
 0xcf9   :  { %699 = vrot.lane.b32.xlu1 %v2026_v40, %s2222_s3 }
 0xcfc   :  { %v2509_v48 = vpop.permute.xlu0 %723 }
 0xcfd   :  { %v726_v50 = vmul.f32 %v2509_v48, %v629_v56 }
 0xd6b   :  { %v700_v42 = vpop.permute.xlu1 %699 }
 0xd6c   :  { %v702_v47 = vmul.f32 %v700_v42, %v697_v41 }
 0xd6e   :  { %v704_v49 = vadd.f32 %v703_v44, %v702_v47 }
 0xd70   :  { %v2513_v52 = vmul.f32 %v2507_v32, %v704_v49 }
 0xd72   :  { %v727_v53 = vadd.f32 %v726_v50, %v2513_v52 }
 0xd74   :  { %v730_v57 = vpack.c.bf16 %v727_v53, %v727_v53 }
 0xd76   :  { %732 = vrot.lane.b32.xlu0 %v730_v57, %s2222_s3  ;;  %v2546_v57 = vld [vmem:[#allocation8] sm:$0xff]  }
 0xde8   :  { %v733_v58 = vpop.permute.xlu0 %732 }
 0xde9   :  { %1892 = vmatmul.mubr.msk.bf16.vlgmr.msra.gmra.mrb[16].mxu1 %vm244_vm3, %v733_v58 }
 0xdea   :  { %1904 = vmatpush3.bf16.msra.mxu1 %v2326_v2  ;;  %1907 = vmatprep.mubr.msk.bf16.mxu1 %vm2221_vm0, %v2219_v0  ;;  %v1774_v2 = vsel %vm803_vm8, 1.0, %v2219_v0 }
 0xdeb   :  { %1905 = vmatprep.subr.bf16.mxu1 %v2219_v0  ;;  %v818_v29 = vsub.f32 1.0, %v1774_v2 }
 0xdee   :  { %1906 = vmatpush3.bf16.msra.mxu1 %v2336_v5 }
 0xdef   :  { %1919 = vmatprep.subr.bf16.mxu1 %v2219_v0 }
 0xebc   :  { %v771_v56 = vpop.f32.mrb[16].mxu1 }
 0xebd   :  { %v772_v8 = vadd.f32 %v2364_v13, %v771_v56  ;;  %v1893_v10 = vpop.f32.mrb[17].mxu1  ;;  %v2550_v56 = vld [vmem:[#allocation8 + $0x8] sm:$0xff]  }
 0xebe   :  { %v774_v12 = vpop.f32.mrb[18].mxu1 }
 0xebf   :  { %785 = vrot.lane.b32.xlu1 %v772_v8, %s2213_s19  ;;  %v1894_v15 = vpop.f32.mrb[19].mxu1  ;;  %v777_v17 = vadd.f32 %v772_v8, %v183_v16 }
 0xec1   :  { %v1773_v5 = vmul.f32 -1.442695, %v777_v17 }
 0xec3   :  { %808 = vperm.xlu1 %1988, %v1774_v2   ;;  %2027 = vpow2.f32 %v1773_v5 }
 0xecd   :  { %v2028_v18 = vpop.eup %2027 }
 0xece   :  { %v781_v21 = vadd.f32 1.0, %v2028_v18 }
 0xed0   :  { %2029 = vrcp.f32 %v781_v21  ;;  %v97_v21 = vsub.s32 1, %v2372_v23 }
 0xeda   :  { %v2030_v22 = vpop.eup %2029 }
 0xedb   :  { %v795_v36 = vsub.f32 1.0, %v2030_v22  ;;  %v801_v39 = vmul.f32 %v2030_v22, %v727_v53 }
 0xf31   :  { %v786_v27 = vpop.permute.xlu1 %785 }
 0xf32   :  { %v788_v28 = vmul.f32 %v2030_v22, %v786_v27  ;;  %v2577_v27 = vrot.slane %v2378_v25, %v97_v21  ;;  %v1777_v25 = vsel %vm901_vm9, 1.0, %v2219_v0 }
 0xf34   :  { %790 = vrot.lane.b32.xlu0 %v788_v28, %s2213_s19 }
 0xf38   :  { %821 = vperm.xlu0 %1989, %v818_v29   ;;  %v195_v29 = vadd.f32 %v2491_v7, %v2577_v27 }
 0xf42   :  { %v2532_v61 = vpop.permute.xlu1 %808 }
 0xfa6   :  { %v791_v30 = vpop.permute.xlu0 %790 }
 0xfa7   :  { %v793_v34 = vadd.f32 %v791_v30, %v183_v16 }
 0xfa9   :  { %2031 = vtanh.f32 %v793_v34 }
 0xfb3   :  { %v2032_v35 = vpop.eup %2031 }
 0xfb4   :  { %797 = vrot.lane.b32.xlu1 %v2032_v35, %s2222_s3 }
 0xfb7   :  { %v2534_v41 = vpop.permute.xlu0 %821 }
 0xfb8   :  { %v824_v44 = vmul.f32 %v2534_v41, %v727_v53 }
0x1026   :  { %v798_v37 = vpop.permute.xlu1 %797 }
0x1027   :  { %v800_v40 = vmul.f32 %v798_v37, %v795_v36 }
0x1029   :  { %v802_v42 = vadd.f32 %v801_v39, %v800_v40 }
0x102b   :  { %v2538_v47 = vmul.f32 %v2532_v61, %v802_v42 }
0x102d   :  { %v2541_v49 = vadd.f32 %v824_v44, %v2538_v47 }
0x102f   :  { %v828_v50 = vpack.c.bf16 %v2541_v49, %v2541_v49 }
0x1031   :  { %830 = vrot.lane.b32.xlu0 %v828_v50, %s2222_s3  ;;  %v916_v50 = vsub.f32 1.0, %v1777_v25 }
0x10a3   :  { %v831_v58 = vpop.permute.xlu0 %830 }
0x10a4   :  { %1900 = vmatmul.mubr.msk.bf16.vlgmr.msra.gmra.mrb[20].mxu0 %vm244_vm3, %v831_v58  ;;  %v1780_v58 = vsel %vm999_vm10, 1.0, %v2219_v0 }
0x10a5   :  { %1912 = vmatpush3.bf16.msra.mxu0 %v2546_v57  ;;  %1915 = vmatprep.mubr.msk.bf16.mxu0 %vm2221_vm0, %v2219_v0 }
0x10a6   :  { %1913 = vmatprep.subr.bf16.mxu0 %v2219_v0 }
0x10a9   :  { %1914 = vmatpush3.bf16.msra.mxu0 %v2550_v56 }
0x10aa   :  { %1927 = vmatprep.subr.bf16.mxu0 %v2219_v0 }
0x10ac   :  { %1916 = vmatmul.mubr.bf16.vlgmr.msra.gmra.mrb[24].mxu0 %v2220_v1  ;;  %v2569_v1 = vld [vmem:[%s2852_s7] ss:$0 sm:$0xff] }
0x10ad   :  { %1928 = vmatpush3.bf16.msra.mxu0 %v2546_v57  ;;  %1931 = vmatprep.mubr.msk.bf16.mxu0 %vm2221_vm0, %v2219_v0 }
0x10ae   :  { %1929 = vmatprep.subr.bf16.mxu0 %v2219_v0 }
0x10b1   :  { %1930 = vmatpush3.bf16.msra.mxu0 %v2550_v56 }
0x10b2   :  { %1943 = vmatprep.subr.bf16.mxu0 %v2219_v0 }
0x1177   :  { %v869_v53 = vpop.f32.mrb[20].mxu0 }
0x1178   :  { %v870_v8 = vadd.f32 %v2364_v13, %v869_v53  ;;  %v1901_v10 = vpop.f32.mrb[21].mxu0  ;;  %v189_v13 = vadd.f32 %v2485_v4, %v2381_v26 }
0x1179   :  { %v872_v12 = vpop.f32.mrb[22].mxu0 }
0x117a   :  { %883 = vrot.lane.b32.xlu1 %v870_v8, %s2213_s19  ;;  %v1902_v15 = vpop.f32.mrb[23].mxu0  ;;  %v875_v22 = vadd.f32 %v870_v8, %v189_v13 }
0x117c   :  { %v1776_v28 = vmul.f32 -1.442695, %v875_v22 }
0x117e   :  { %2033 = vpow2.f32 %v1776_v28 }
0x117f   :  { %v1081_v2 = vpop.f32.mrb[24].mxu0 }
0x1180   :  { %v1082_v16 = vadd.f32 %v2569_v1, %v1081_v2  ;;  %v1917_v17 = vpop.f32.mrb[25].mxu0  ;;  %v1014_v2 = vsub.f32 1.0, %v1780_v58 }
0x1181   :  { %v1084_v5 = vpop.f32.mrb[26].mxu0 }
0x1182   :  { %1095 = vrot.lane.b32.xlu0 %v1082_v16, %s2213_s19  ;;  %v1918_v18 = vpop.f32.mrb[27].mxu0  ;;  %v1087_v30 = vadd.f32 %v1082_v16, %v195_v29 }
0x1184   :  { %v1784_v34 = vmul.f32 -1.442695, %v1087_v30 }
0x1186   :  { %2035 = vpow2.f32 %v1784_v34 }
0x1188   :  { %v2034_v35 = vpop.eup %2033 }
0x1189   :  { %v879_v36 = vadd.f32 1.0, %v2034_v35 }
0x118b   :  { %2037 = vrcp.f32 %v879_v36 }
0x1190   :  { %v2036_v37 = vpop.eup %2035 }
0x1191   :  { %v1091_v39 = vadd.f32 1.0, %v2036_v37 }
0x1193   :  { %2039 = vrcp.f32 %v1091_v39 }
0x1195   :  { %v2038_v4 = vpop.eup %2037 }
0x1196   :  { %v893_v5 = vsub.f32 1.0, %v2038_v4 }
0x119d   :  { %v2040_v7 = vpop.eup %2039 }
0x119e   :  { %v1105_v35 = vsub.f32 1.0, %v2040_v7 }
0x11ec   :  { %v884_v23 = vpop.permute.xlu1 %883 }
0x11ed   :  { %v886_v40 = vmul.f32 %v2038_v4, %v884_v23 }
0x11ef   :  { %888 = vrot.lane.b32.xlu1 %v886_v40, %s2213_s19 }
0x11f3   :  { %906 = vperm.xlu1 %1988, %v1777_v25  }
0x11f4   :  { %v1096_v42 = vpop.permute.xlu0 %1095 }
0x11f5   :  { %v1098_v44 = vmul.f32 %v2040_v7, %v1096_v42 }
0x11f7   :  { %1100 = vrot.lane.b32.xlu0 %v1098_v44, %s2213_s19 }
0x11fb   :  { %919 = vperm.xlu0 %1989, %v916_v50  }
0x11ff   :  { %1004 = vperm.xlu0 %1989, %v1780_v58  }
0x1261   :  { %v889_v53 = vpop.permute.xlu1 %888 }
0x1262   :  { %v891_v8 = vadd.f32 %v889_v53, %v189_v13  ;;  %v899_v13 = vmul.f32 %v2038_v4, %v2541_v49  ;;  %v1111_v4 = vmul.f32 0.0, %v2040_v7 }
0x1264   :  { %2041 = vtanh.f32 %v891_v8 }
0x1269   :  { %v1101_v10 = vpop.permute.xlu0 %1100 }
0x126a   :  { %v1103_v12 = vadd.f32 %v1101_v10, %v195_v29 }
0x126c   :  { %2043 = vtanh.f32 %v1103_v12 }
0x126e   :  { %v2042_v15 = vpop.eup %2041 }
0x126f   :  { %895 = vrot.lane.b32.xlu1 %v2042_v15, %s2222_s3 }
0x1272   :  { %v2589_v17 = vpop.permute.xlu1 %906 }
0x1273   :  { %1017 = vperm.xlu1 %1988, %v1014_v2  }
0x1276   :  { %v2044_v16 = vpop.eup %2043 }
0x1277   :  { %1107 = vrot.lane.b32.xlu0 %v2044_v16, %s2222_s3 }
0x127a   :  { %v2591_v9 = vpop.permute.xlu0 %919 }
0x127b   :  { %v922_v29 = vmul.f32 %v2591_v9, %v2541_v49 }
0x127e   :  { %v2594_v28 = vpop.permute.xlu0 %1004 }
0x12e1   :  { %v896_v18 = vpop.permute.xlu1 %895 }
0x12e2   :  { %v898_v21 = vmul.f32 %v896_v18, %v893_v5  ;;  %v191_v18 = vadd.f32 %v2487_v6, %v2577_v27 }
0x12e4   :  { %v900_v22 = vadd.f32 %v899_v13, %v898_v21 }
0x12e6   :  { %v2599_v30 = vmul.f32 %v2589_v17, %v900_v22 }
0x12e8   :  { %v2602_v34 = vadd.f32 %v922_v29, %v2599_v30 }
0x12e9   :  { %v1108_v36 = vpop.permute.xlu0 %1107 }
0x12ea   :  { %v926_v37 = vpack.c.bf16 %v2602_v34, %v2602_v34  ;;  %v1110_v39 = vmul.f32 %v1108_v36, %v1105_v35 }
0x12ec   :  { %928 = vrot.lane.b32.xlu1 %v926_v37, %s2222_s3  ;;  %v1112_v23 = vadd.f32 %v1111_v4, %v1110_v39 }
0x12ee   :  { %v2610_v49 = vmul.f32 %v1112_v23, %v2594_v28 }
0x12f2   :  { %v2607_v40 = vpop.permute.xlu1 %1017 }
0x12f3   :  { %v1120_v25 = vmul.f32 0.0, %v2607_v40 }
0x12f5   :  { %v1121_v42 = vadd.f32 %v1120_v25, %v2610_v49 }
0x12f7   :  { %v1124_v44 = vpack.c.bf16 %v1121_v42, %v1121_v42 }
0x12f9   :  { %1126 = vrot.lane.b32.xlu0 %v1124_v44, %s2222_s3 }
0x135e   :  { %v929_v50 = vpop.permute.xlu1 %928 }
0x135f   :  { %1908 = vmatmul.mubr.msk.bf16.vlgmr.msra.gmra.mrb[20].mxu1 %vm244_vm3, %v929_v50 }
0x1360   :  { %1920 = vmatpush3.bf16.msra.mxu1 %v2546_v57  ;;  %1923 = vmatprep.mubr.msk.bf16.mxu1 %vm2221_vm0, %v2219_v0 }
0x1361   :  { %1921 = vmatprep.subr.bf16.mxu1 %v2219_v0 }
0x1364   :  { %1922 = vmatpush3.bf16.msra.mxu1 %v2550_v56 }
0x1365   :  { %1935 = vmatprep.subr.bf16.mxu1 %v2219_v0 }
0x136b   :  { %v1127_v7 = vpop.permute.xlu0 %1126 }
0x136c   :  { %1924 = vmatmul.mubr.msk.bf16.vlgmr.msra.gmra.mrb[24].mxu1 %vm244_vm3, %v1127_v7 }
0x136d   :  { %1936 = vmatpush3.bf16.msra.mxu1 %v2546_v57  ;;  %1939 = vmatprep.mubr.msk.bf16.mxu1 %vm2221_vm0, %v2219_v0 }
0x136e   :  { %1937 = vmatprep.subr.bf16.mxu1 %v2219_v0 }
0x1371   :  { %1938 = vmatpush3.bf16.msra.mxu1 %v2550_v56 }
0x1372   :  { %1951 = vmatprep.subr.bf16.mxu1 %v2219_v0 }
0x1432   :  { %v2629_v58 = vpop.f32.mrb[20].mxu1 }
0x1433   :  { %v1909_v53 = vpop.f32.mrb[21].mxu1 }
0x1434   :  { %v970_v8 = vpop.f32.mrb[22].mxu1  ;;  %v1204_v53 = vmul.f32 %v1121_v42, %v2591_v9 }
0x1435   :  { %v1910_v10 = vpop.f32.mrb[23].mxu1 }
0x143f   :  { %v1165_v12 = vpop.f32.mrb[24].mxu1 }
0x1440   :  { %v1166_v15 = vadd.f32 %v2569_v1, %v1165_v12  ;;  %v1925_v2 = vpop.f32.mrb[25].mxu1 }
0x1441   :  { %v1168_v16 = vpop.f32.mrb[26].mxu1 }
0x1442   :  { %1179 = vrot.lane.b32.xlu1 %v1166_v15, %s2213_s19  ;;  %v1926_v5 = vpop.f32.mrb[27].mxu1  ;;  %v1171_v13 = vadd.f32 %v1166_v15, %v191_v18 }
0x1443   :  { %v185_v5 = vadd.f32 %v2483_v62, %v2577_v27 }
0x1444   :  { %v1786_v21 = vmul.f32 -1.442695, %v1171_v13 }
0x1446   :  { %2045 = vpow2.f32 %v1786_v21 }
0x1450   :  { %v2046_v22 = vpop.eup %2045 }
0x1451   :  { %v1175_v29 = vadd.f32 1.0, %v2046_v22 }
0x1453   :  { %2047 = vrcp.f32 %v1175_v29 }
0x145d   :  { %v2048_v35 = vpop.eup %2047 }
0x145e   :  { %v1189_v25 = vsub.f32 1.0, %v2048_v35  ;;  %v1195_v6 = vmul.f32 %v2048_v35, %v1121_v42 }
0x14b4   :  { %v1180_v36 = vpop.permute.xlu1 %1179 }
0x14b5   :  { %v1182_v37 = vmul.f32 %v2048_v35, %v1180_v36 }
0x14b7   :  { %1184 = vrot.lane.b32.xlu0 %v1182_v37, %s2213_s19 }
0x1529   :  { %v1185_v39 = vpop.permute.xlu0 %1184 }
0x152a   :  { %v1187_v4 = vadd.f32 %v1185_v39, %v191_v18 }
0x152c   :  { %2049 = vtanh.f32 %v1187_v4 }
0x1536   :  { %v2050_v23 = vpop.eup %2049 }
0x1537   :  { %1191 = vrot.lane.b32.xlu1 %v2050_v23, %s2222_s3 }
0x15a9   :  { %v1192_v44 = vpop.permute.xlu1 %1191 }
0x15aa   :  { %v1194_v50 = vmul.f32 %v1192_v44, %v1189_v25 }
0x15ac   :  { %v1196_v7 = vadd.f32 %v1195_v6, %v1194_v50 }
0x15ae   :  { %v2639_v8 = vmul.f32 %v1196_v7, %v2589_v17 }
0x15b0   :  { %v1205_v10 = vadd.f32 %v1204_v53, %v2639_v8 }
0x15b2   :  { %v1208_v12 = vpack.c.bf16 %v1205_v10, %v1205_v10  ;;  %v1288_v50 = vmul.f32 %v1205_v10, %v2534_v41 }
0x15b4   :  { %1210 = vrot.lane.b32.xlu0 %v1208_v12, %s2222_s3 }
0x1626   :  { %v1211_v15 = vpop.permute.xlu0 %1210 }
0x1627   :  { %1932 = vmatmul.mubr.msk.bf16.vlgmr.msra.gmra.mrb[28].mxu0 %vm244_vm3, %v1211_v15 }
0x1628   :  { %1944 = vmatpush3.bf16.msra.mxu0 %v2546_v57  ;;  %1947 = vmatprep.mubr.msk.bf16.mxu0 %vm2221_vm0, %v2219_v0 }
0x1629   :  { %1945 = vmatprep.subr.bf16.mxu0 %v2219_v0 }
0x162c   :  { %1946 = vmatpush3.bf16.msra.mxu0 %v2550_v56 }
0x162d   :  { %1959 = vmatprep.subr.bf16.mxu0 %v2219_v0 }
0x16fa   :  { %v1249_v17 = vpop.f32.mrb[28].mxu0 }
0x16fb   :  { %v1250_v9 = vadd.f32 %v2569_v1, %v1249_v17  ;;  %v1933_v42 = vpop.f32.mrb[29].mxu0 }
0x16fc   :  { %v1252_v2 = vpop.f32.mrb[30].mxu0  ;;  %v181_v42 = vadd.f32 %v2479_v59, %v2577_v27 }
0x16fd   :  { %1263 = vrot.lane.b32.xlu1 %v1250_v9, %s2213_s19  ;;  %v1934_v16 = vpop.f32.mrb[31].mxu0  ;;  %v1255_v18 = vadd.f32 %v1250_v9, %v185_v5 }
0x16ff   :  { %v1788_v13 = vmul.f32 -1.442695, %v1255_v18 }
0x1701   :  { %2051 = vpow2.f32 %v1788_v13 }
0x170b   :  { %v2052_v21 = vpop.eup %2051 }
0x170c   :  { %v1259_v22 = vadd.f32 1.0, %v2052_v21 }
0x170e   :  { %2053 = vrcp.f32 %v1259_v22 }
0x1718   :  { %v2054_v29 = vpop.eup %2053 }
0x1719   :  { %v1273_v23 = vsub.f32 1.0, %v2054_v29  ;;  %v1279_v62 = vmul.f32 %v2054_v29, %v1205_v10 }
0x176f   :  { %v1264_v35 = vpop.permute.xlu1 %1263 }
0x1770   :  { %v1266_v36 = vmul.f32 %v2054_v29, %v1264_v35 }
0x1772   :  { %1268 = vrot.lane.b32.xlu0 %v1266_v36, %s2213_s19 }
0x17e4   :  { %v1269_v37 = vpop.permute.xlu0 %1268 }
0x17e5   :  { %v1271_v39 = vadd.f32 %v1269_v37, %v185_v5 }
0x17e7   :  { %2055 = vtanh.f32 %v1271_v39 }
0x17f1   :  { %v2056_v4 = vpop.eup %2055 }
0x17f2   :  { %1275 = vrot.lane.b32.xlu1 %v2056_v4, %s2222_s3 }
0x1864   :  { %v1276_v25 = vpop.permute.xlu1 %1275 }
0x1865   :  { %v1278_v44 = vmul.f32 %v1276_v25, %v1273_v23 }
0x1867   :  { %v1280_v6 = vadd.f32 %v1279_v62, %v1278_v44 }
0x1869   :  { %v2658_v7 = vmul.f32 %v1280_v6, %v2532_v61 }
0x186b   :  { %v1289_v53 = vadd.f32 %v1288_v50, %v2658_v7 }
0x186d   :  { %v1292_v12 = vpack.c.bf16 %v1289_v53, %v1289_v53  ;;  %v1372_v25 = vmul.f32 %v1289_v53, %v2509_v48 }
0x186f   :  { %1294 = vrot.lane.b32.xlu0 %v1292_v12, %s2222_s3 }
0x18e1   :  { %v1295_v15 = vpop.permute.xlu0 %1294 }
0x18e2   :  { %1940 = vmatmul.mubr.msk.bf16.vlgmr.msra.gmra.mrb[28].mxu1 %vm244_vm3, %v1295_v15 }
0x18e3   :  { %1952 = vmatpush3.bf16.msra.mxu1 %v2546_v57  ;;  %1955 = vmatprep.mubr.msk.bf16.mxu1 %vm2221_vm0, %v2219_v0 }
0x18e4   :  { %1953 = vmatprep.subr.bf16.mxu1 %v2219_v0 }
0x18e7   :  { %1954 = vmatpush3.bf16.msra.mxu1 %v2550_v56 }
0x18e8   :  { %1967 = vmatprep.subr.bf16.mxu1 %v2219_v0 }
0x19b5   :  { %v1333_v61 = vpop.f32.mrb[28].mxu1 }
0x19b6   :  { %v1334_v41 = vadd.f32 %v2569_v1, %v1333_v61  ;;  %v1941_v10 = vpop.f32.mrb[29].mxu1  ;;  %v175_v61 = vadd.f32 %v2431_v33, %v2577_v27 }
0x19b7   :  { %v1336_v17 = vpop.f32.mrb[30].mxu1 }
0x19b8   :  { %1347 = vrot.lane.b32.xlu1 %v1334_v41, %s2213_s19  ;;  %v1942_v9 = vpop.f32.mrb[31].mxu1  ;;  %v1339_v2 = vadd.f32 %v1334_v41, %v181_v42 }
0x19ba   :  { %v1790_v16 = vmul.f32 -1.442695, %v1339_v2 }
0x19bc   :  { %2057 = vpow2.f32 %v1790_v16 }
0x19c6   :  { %v2058_v5 = vpop.eup %2057 }
0x19c7   :  { %v1343_v18 = vadd.f32 1.0, %v2058_v5 }
0x19c9   :  { %2059 = vrcp.f32 %v1343_v18 }
0x19d3   :  { %v2060_v13 = vpop.eup %2059 }
0x19d4   :  { %v1357_v37 = vsub.f32 1.0, %v2060_v13  ;;  %v1363_v59 = vmul.f32 %v2060_v13, %v1289_v53 }
0x1a2a   :  { %v1348_v21 = vpop.permute.xlu1 %1347 }
0x1a2b   :  { %v1350_v22 = vmul.f32 %v2060_v13, %v1348_v21 }
0x1a2d   :  { %1352 = vrot.lane.b32.xlu0 %v1350_v22, %s2213_s19 }
0x1a9f   :  { %v1353_v29 = vpop.permute.xlu0 %1352 }
0x1aa0   :  { %v1355_v35 = vadd.f32 %v1353_v29, %v181_v42 }
0x1aa2   :  { %2061 = vtanh.f32 %v1355_v35 }
0x1aac   :  { %v2062_v36 = vpop.eup %2061 }
0x1aad   :  { %1359 = vrot.lane.b32.xlu1 %v2062_v36, %s2222_s3 }
0x1b1f   :  { %v1360_v39 = vpop.permute.xlu1 %1359 }
0x1b20   :  { %v1362_v4 = vmul.f32 %v1360_v39, %v1357_v37 }
0x1b22   :  { %v1364_v23 = vadd.f32 %v1363_v59, %v1362_v4 }
0x1b24   :  { %v2677_v62 = vmul.f32 %v1364_v23, %v2507_v32 }
0x1b26   :  { %v1373_v44 = vadd.f32 %v1372_v25, %v2677_v62 }
0x1b28   :  { %v1376_v6 = vpack.c.bf16 %v1373_v44, %v1373_v44  ;;  %v1456_v36 = vmul.f32 %v1373_v44, %v2471_v51 }
0x1b2a   :  { %1378 = vrot.lane.b32.xlu0 %v1376_v6, %s2222_s3  ;;  %v171_v6 = vadd.f32 %v2429_v31, %v2577_v27 }
0x1b9c   :  { %v1379_v50 = vpop.permute.xlu0 %1378 }
0x1b9d   :  { %1948 = vmatmul.mubr.msk.bf16.vlgmr.msra.gmra.mrb[32].mxu0 %vm244_vm3, %v1379_v50 }
0x1b9e   :  { %1960 = vmatpush3.bf16.msra.mxu0 %v2546_v57  ;;  %1963 = vmatprep.mubr.msk.bf16.mxu0 %vm2221_vm0, %v2219_v0 }
0x1b9f   :  { %1961 = vmatprep.subr.bf16.mxu0 %v2219_v0 }
0x1ba2   :  { %1962 = vmatpush3.bf16.msra.mxu0 %v2550_v56 }
0x1c70   :  { %v1417_v48 = vpop.f32.mrb[32].mxu0 }
0x1c71   :  { %v1418_v32 = vadd.f32 %v2569_v1, %v1417_v48  ;;  %v1949_v53 = vpop.f32.mrb[33].mxu0 }
0x1c72   :  { %v1420_v12 = vpop.f32.mrb[34].mxu0 }
0x1c73   :  { %1431 = vrot.lane.b32.xlu1 %v1418_v32, %s2213_s19  ;;  %v1950_v15 = vpop.f32.mrb[35].mxu0  ;;  %v1423_v41 = vadd.f32 %v1418_v32, %v175_v61 }
0x1c75   :  { %v1792_v10 = vmul.f32 -1.442695, %v1423_v41 }
0x1c77   :  { %2063 = vpow2.f32 %v1792_v10 }
0x1c81   :  { %v2064_v17 = vpop.eup %2063 }
0x1c82   :  { %v1427_v9 = vadd.f32 1.0, %v2064_v17 }
0x1c84   :  { %2065 = vrcp.f32 %v1427_v9 }
0x1c8e   :  { %v2066_v42 = vpop.eup %2065 }
0x1c8f   :  { %v1441_v21 = vsub.f32 1.0, %v2066_v42  ;;  %v1447_v33 = vmul.f32 %v2066_v42, %v1373_v44 }
0x1ce5   :  { %v1432_v2 = vpop.permute.xlu1 %1431 }
0x1ce6   :  { %v1434_v16 = vmul.f32 %v2066_v42, %v1432_v2 }
0x1ce8   :  { %1436 = vrot.lane.b32.xlu0 %v1434_v16, %s2213_s19 }
0x1d5a   :  { %v1437_v5 = vpop.permute.xlu0 %1436 }
0x1d5b   :  { %v1439_v18 = vadd.f32 %v1437_v5, %v175_v61 }
0x1d5d   :  { %2067 = vtanh.f32 %v1439_v18 }
0x1d67   :  { %v2068_v13 = vpop.eup %2067 }
0x1d68   :  { %1443 = vrot.lane.b32.xlu1 %v2068_v13, %s2222_s3 }
0x1dda   :  { %v1444_v22 = vpop.permute.xlu1 %1443 }
0x1ddb   :  { %v1446_v29 = vmul.f32 %v1444_v22, %v1441_v21 }
0x1ddd   :  { %v1448_v35 = vadd.f32 %v1447_v33, %v1446_v29 }
0x1ddf   :  { %v2695_v37 = vmul.f32 %v1448_v35, %v2469_v45 }
0x1de1   :  { %v1457_v39 = vadd.f32 %v1456_v36, %v2695_v37 }
0x1de3   :  { %v1460_v59 = vpack.c.bf16 %v1457_v39, %v1457_v39  ;;  %v1540_v42 = vmul.f32 %v1457_v39, %v2442_v60 }
0x1de5   :  { %1462 = vrot.lane.b32.xlu0 %v1460_v59, %s2222_s3 }
0x1e57   :  { %v1463_v4 = vpop.permute.xlu0 %1462 }
0x1e58   :  { %1956 = vmatmul.mubr.msk.bf16.vlgmr.msra.gmra.mrb[32].mxu1 %vm244_vm3, %v1463_v4 }
0x1e59   :  { %1968 = vmatpush3.bf16.msra.mxu1 %v2546_v57  ;;  %1971 = vmatprep.mubr.msk.bf16.mxu1 %vm2221_vm0, %v2219_v0 }
0x1e5a   :  { %1969 = vmatprep.subr.bf16.mxu1 %v2219_v0 }
0x1e5d   :  { %1970 = vmatpush3.bf16.msra.mxu1 %v2550_v56 }
0x1f2b   :  { %v1501_v51 = vpop.f32.mrb[32].mxu1 }
0x1f2c   :  { %v1502_v45 = vadd.f32 %v2569_v1, %v1501_v51  ;;  %v1957_v23 = vpop.f32.mrb[33].mxu1 }
0x1f2d   :  { %v1504_v25 = vpop.f32.mrb[34].mxu1 }
0x1f2e   :  { %1515 = vrot.lane.b32.xlu1 %v1502_v45, %s2213_s19  ;;  %v1958_v44 = vpop.f32.mrb[35].mxu1  ;;  %v1507_v50 = vadd.f32 %v1502_v45, %v171_v6 }
0x1f30   :  { %v1794_v57 = vmul.f32 -1.442695, %v1507_v50 }
0x1f32   :  { %2069 = vpow2.f32 %v1794_v57 }
0x1f3c   :  { %v2070_v48 = vpop.eup %2069 }
0x1f3d   :  { %v1511_v32 = vadd.f32 1.0, %v2070_v48 }
0x1f3f   :  { %2071 = vrcp.f32 %v1511_v32 }
0x1f49   :  { %v2072_v0 = vpop.eup %2071 }
0x1f4a   :  { %v1525_v41 = vsub.f32 1.0, %v2072_v0  ;;  %v1531_v31 = vmul.f32 %v2072_v0, %v1457_v39 }
0x1fa0   :  { %v1516_v53 = vpop.permute.xlu1 %1515 }
0x1fa1   :  { %v1518_v56 = vmul.f32 %v2072_v0, %v1516_v53 }
0x1fa3   :  { %1520 = vrot.lane.b32.xlu0 %v1518_v56, %s2213_s19 }
0x2015   :  { %v1521_v12 = vpop.permute.xlu0 %1520 }
0x2016   :  { %v1523_v15 = vadd.f32 %v1521_v12, %v171_v6  ;;  %v193_v6 = vadd.f32 %v2489_v3, %v2381_v26 }
0x2018   :  { %2073 = vtanh.f32 %v1523_v15 }
0x2022   :  { %v2074_v61 = vpop.eup %2073 }
0x2023   :  { %1527 = vrot.lane.b32.xlu1 %v2074_v61, %s2222_s3 }
0x2095   :  { %v1528_v10 = vpop.permute.xlu1 %1527 }
0x2096   :  { %v1530_v17 = vmul.f32 %v1528_v10, %v1525_v41 }
0x2098   :  { %v1532_v9 = vadd.f32 %v1531_v31, %v1530_v17 }
0x209a   :  { %v2713_v2 = vmul.f32 %v1532_v9, %v2440_v55  ;;  %v165_v55 = vadd.f32 %v2369_v19, %v2577_v27  ;;  %v2093_v19 = vld [vmem:[%s2850_s5] ss:$0 sm:$0xff]  ;;  %s2223_s5 = smov [#allocation9]  }
0x209b   :  { %v968_v44 = vadd.f32 %v2093_v19, %v2629_v58 }
0x209c   :  { %v1541_v16 = vadd.f32 %v1540_v42, %v2713_v2 }
0x209d   :  { %v973_v50 = vadd.f32 %v968_v44, %v193_v6 }
0x209e   :  { %v1544_v5 = vpack.c.bf16 %v1541_v16, %v1541_v16  ;;  %v1624_v58 = vmul.f32 %v1541_v16, %v2410_v11 }
0x209f   :  { %v1779_v57 = vmul.f32 -1.442695, %v973_v50 }
0x20a0   :  { %1546 = vrot.lane.b32.xlu0 %v1544_v5, %s2222_s3 }
0x2112   :  { %v1547_v18 = vpop.permute.xlu0 %1546 }
0x2113   :  { %1964 = vmatmul.mubr.msk.bf16.vlgmr.msra.gmra.mrb[36].mxu0 %vm244_vm3, %v1547_v18 }
0x21e6   :  { %v1585_v13 = vpop.f32.mrb[36].mxu0 }
0x21e7   :  { %v1586_v21 = vadd.f32 %v2569_v1, %v1585_v13  ;;  %v1965_v22 = vpop.f32.mrb[37].mxu0 }
0x21e8   :  { %v1588_v33 = vpop.f32.mrb[38].mxu0  ;;  %v1020_v22 = vmul.f32 %v2607_v40, %v2602_v34 }
0x21e9   :  { %1599 = vrot.lane.b32.xlu1 %v1586_v21, %s2213_s19  ;;  %v1966_v29 = vpop.f32.mrb[39].mxu0  ;;  %v1591_v60 = vadd.f32 %v1586_v21, %v165_v55 }
0x21eb   :  { %v1796_v35 = vmul.f32 -1.442695, %v1591_v60 }
0x21ed   :  { %2075 = vpow2.f32 %v1796_v35 }
0x21f7   :  { %v2076_v36 = vpop.eup %2075 }
0x21f8   :  { %v1595_v39 = vadd.f32 1.0, %v2076_v36 }
0x21fa   :  { %2077 = vrcp.f32 %v1595_v39 }
0x2204   :  { %v2078_v59 = vpop.eup %2077 }
0x2205   :  { %v1609_v0 = vsub.f32 1.0, %v2078_v59  ;;  %v1615_v56 = vmul.f32 %v2078_v59, %v1541_v16 }
0x225b   :  { %v1600_v4 = vpop.permute.xlu1 %1599 }
0x225c   :  { %v1602_v51 = vmul.f32 %v2078_v59, %v1600_v4 }
0x225e   :  { %1604 = vrot.lane.b32.xlu0 %v1602_v51, %s2213_s19 }
0x22d0   :  { %v1605_v45 = vpop.permute.xlu0 %1604 }
0x22d1   :  { %v1607_v23 = vadd.f32 %v1605_v45, %v165_v55 }
0x22d3   :  { %2079 = vtanh.f32 %v1607_v23 }
0x22d4   :  { %2081 = vpow2.f32 %v1779_v57 }
0x22dd   :  { %v2080_v25 = vpop.eup %2079 }
0x22de   :  { %1611 = vrot.lane.b32.xlu1 %v2080_v25, %s2222_s3  ;;  %v2082_v48 = vpop.eup %2081 }
0x22df   :  { %v977_v32 = vadd.f32 1.0, %v2082_v48 }
0x22e1   :  { %2083 = vrcp.f32 %v977_v32 }
0x22e2   :  { %981 = vrot.lane.b32.xlu1 %v968_v44, %s2213_s19 }
0x22eb   :  { %v2084_v61 = vpop.eup %2083 }
0x22ec   :  { %v997_v5 = vmul.f32 %v2084_v61, %v2602_v34 }
0x2350   :  { %v1612_v53 = vpop.permute.xlu1 %1611 }
0x2351   :  { %v1614_v12 = vmul.f32 %v1612_v53, %v1609_v0 }
0x2353   :  { %v1616_v15 = vadd.f32 %v1615_v56, %v1614_v12 }
0x2354   :  { %v982_v41 = vpop.permute.xlu1 %981 }
0x2355   :  { %v2733_v10 = vmul.f32 %v1616_v15, %v2414_v20  ;;  %v984_v31 = vmul.f32 %v2084_v61, %v982_v41  ;;  %v991_v20 = vsub.f32 1.0, %v2084_v61 }
0x2357   :  { %v2736_v26 = vadd.f32 %v1624_v58, %v2733_v10  ;;  %986 = vrot.lane.b32.xlu1 %v984_v31, %s2213_s19 }
0x2359   :  { %v1627_v3 = vpack.c.bf16 %v2736_v26, %v2736_v26 }
0x235b   :  { %1629 = vrot.lane.b32.xlu0 %v1627_v3, %s2222_s3 }
0x23c9   :  { %v987_v17 = vpop.permute.xlu1 %986 }
0x23ca   :  { %v989_v9 = vadd.f32 %v987_v17, %v193_v6 }
0x23cc   :  { %2085 = vtanh.f32 %v989_v9 }
0x23cd   :  { %v1630_v42 = vpop.permute.xlu0 %1629 }
0x23ce   :  { %1972 = vmatmul.mubr.msk.bf16.vlgmr.msra.gmra.mrb[36].mxu1 %vm244_vm3, %v1630_v42 }
0x23d6   :  { %v2086_v11 = vpop.eup %2085 }
0x23d7   :  { %993 = vrot.lane.b32.xlu1 %v2086_v11, %s2222_s3 }
0x23db   :  { %324 = vrot.lane.b32.xlu1 %v2392_v46, %s2222_s3 }
0x23df   :  { %519 = vrot.lane.b32.xlu1 %v2446_v63, %s2222_s3 }
0x23e3   :  { %715 = vrot.lane.b32.xlu1 %v2513_v52, %s2222_s3 }
0x23e7   :  { %911 = vrot.lane.b32.xlu1 %v2599_v30, %s2222_s3 }
0x2449   :  { %v994_v16 = vpop.permute.xlu1 %993 }
0x244a   :  { %v996_v18 = vmul.f32 %v994_v16, %v991_v20 }
0x244c   :  { %v998_v13 = vadd.f32 %v997_v5, %v996_v18 }
0x244d   :  { %v325_v21 = vpop.permute.xlu1 %324 }
0x244e   :  { %v1007_v46 = vmul.f32 %v2594_v28, %v998_v13  ;;  %327 = vst.msk [vmem:[#allocation9] sm:$0xff] %vm244_vm3, %v325_v21 }
0x2450   :  { %v1021_v63 = vadd.f32 %v1020_v22, %v1007_v46 }
0x2451   :  { %v520_v33 = vpop.permute.xlu1 %519 }
0x2452   :  { %523 = vst.msk [vmem:[#allocation9 + $0x10] sm:$0xff] %vm244_vm3, %v520_v33  ;;  %1023 = vrot.lane.b32.xlu1 %v1021_v63, %s2222_s3 }
0x2455   :  { %v716_v52 = vpop.permute.xlu1 %715 }
0x2456   :  { %719 = vst.msk [vmem:[#allocation9 + $0x20] sm:$0xff] %vm244_vm3, %v716_v52  ;;  %1199 = vrot.lane.b32.xlu1 %v2639_v8, %s2222_s3 }
0x2459   :  { %v912_v30 = vpop.permute.xlu1 %911 }
0x245a   :  { %915 = vst.msk [vmem:[#allocation9 + $0x30] sm:$0xff] %vm244_vm3, %v912_v30  ;;  %1367 = vrot.lane.b32.xlu1 %v2677_v62, %s2222_s3 }
0x245e   :  { %1535 = vrot.lane.b32.xlu1 %v2713_v2, %s2222_s3 }
0x24a1   :  { %v1668_v28 = vpop.f32.mrb[36].mxu1 }
0x24a2   :  { %v1669_v34 = vadd.f32 %v2569_v1, %v1668_v28  ;;  %v1973_v40 = vpop.f32.mrb[37].mxu1  ;;  %v161_v1 = vadd.f32 %v2366_v14, %v2577_v27 }
0x24a3   :  { %v1671_v29 = vpop.f32.mrb[38].mxu1 }
0x24a4   :  { %1682 = vrot.lane.b32.xlu0 %v1669_v34, %s2213_s19  ;;  %v1974_v55 = vpop.f32.mrb[39].mxu1  ;;  %v1674_v2 = vadd.f32 %v1669_v34, %v161_v1 }
0x24a6   :  { %v1798_v36 = vmul.f32 -1.442695, %v1674_v2 }
0x24a8   :  { %2087 = vpow2.f32 %v1798_v36 }
0x24b2   :  { %v2088_v39 = vpop.eup %2087 }
0x24b3   :  { %v1678_v59 = vadd.f32 1.0, %v2088_v39 }
0x24b5   :  { %2089 = vrcp.f32 %v1678_v59 }
0x24bf   :  { %v2090_v4 = vpop.eup %2089 }
0x24c0   :  { %v1692_v14 = vsub.f32 1.0, %v2090_v4 }
0x24c4   :  { %v1024_v60 = vpop.permute.xlu1 %1023 }
0x24c5   :  { %1026 = vst.msk [vmem:[#allocation10] sm:$0xff] %vm244_vm3, %v1024_v60 }
0x24c8   :  { %v1200_v8 = vpop.permute.xlu1 %1199 }
0x24c9   :  { %1203 = vst.msk [vmem:[#allocation9 + $0x70] sm:$0xff] %vm244_vm3, %v1200_v8 }
0x24cc   :  { %v1368_v35 = vpop.permute.xlu1 %1367 }
0x24cd   :  { %1371 = vst.msk [vmem:[#allocation9 + $0x60] sm:$0xff] %vm244_vm3, %v1368_v35 }
0x24d0   :  { %v1536_v62 = vpop.permute.xlu1 %1535 }
0x24d1   :  { %1539 = vst.msk [vmem:[#allocation9 + $0x50] sm:$0xff] %vm244_vm3, %v1536_v62 }
0x2516   :  { %v1683_v51 = vpop.permute.xlu0 %1682 }
0x2517   :  { %v1685_v45 = vmul.f32 %v2090_v4, %v1683_v51 }
0x2519   :  { %1687 = vrot.lane.b32.xlu0 %v1685_v45, %s2213_s19  ;;  %s1720_s19 = sshll.u32 %s2223_s5, 4  ;;  %s1721_s19 = int_to_ptr.vmem [resolvable:$true] %s1720_s19 }
0x251a   :  { %s2160_s21 = scalar_lea.vmem %s1721_s19, 2048  ;;  %p2165_p11 = scmp.lt.s32.totalorder %s1721_s19, %s1721_s19 }
0x251b   :  { %p2161_p10 = scmp.ne.s32.totalorder %s1721_s19, %s2160_s21  ;;  %p2166_p12 = scmp.lt.s32.totalorder %s2160_s21, %s2160_s21 }
0x251d   :  { %p2167_p13 = por %p2166_p12, %p2165_p11 }
0x251f   :  { %p2168_p0 = pnand %p2167_p13, %p2161_p10 }
0x258b   :  { %v1688_v23 = vpop.permute.xlu0 %1687 }
0x258c   :  { %v1690_v25 = vadd.f32 %v1688_v23, %v161_v1 }
0x258e   :  { %2091 = vtanh.f32 %v1690_v25 }
0x2598   :  { %v2092_v19 = vpop.eup %2091 }
0x2599   :  { %1694 = vrot.lane.b32.xlu0 %v2092_v19, %s2222_s3 }
0x259d   :  { %421 = vrot.lane.b32.xlu0 %v2418_v24, %s2222_s3 }
0x25a1   :  { %617 = vrot.lane.b32.xlu0 %v2475_v54, %s2222_s3  ;;  %v1698_v54 = vmul.f32 %v2090_v4, %v2736_v26 }
0x25a5   :  { %813 = vrot.lane.b32.xlu0 %v2538_v47, %s2222_s3 }
0x25a9   :  { %1009 = vrot.lane.b32.xlu0 %v1007_v46, %s2222_s3 }
0x25ad   :  { %1115 = vrot.lane.b32.xlu0 %v2610_v49, %s2222_s3 }
0x25b1   :  { %1283 = vrot.lane.b32.xlu0 %v2658_v7, %s2222_s3  ;;  %v1707_v7 = vmul.f32 %v2736_v26, %v2388_v43 }
0x25b5   :  { %1451 = vrot.lane.b32.xlu0 %v2695_v37, %s2222_s3 }
0x25b9   :  { %1619 = vrot.lane.b32.xlu0 %v2733_v10, %s2222_s3 }
0x260b   :  { %v1695_v24 = vpop.permute.xlu0 %1694 }
0x260c   :  { %v1697_v27 = vmul.f32 %v1695_v24, %v1692_v14 }
0x260e   :  { %v1699_v47 = vadd.f32 %v1698_v54, %v1697_v27 }
0x260f   :  { %v422_v44 = vpop.permute.xlu0 %421 }
0x2610   :  { %425 = vst.msk [vmem:[#allocation9 + $0x8] sm:$0xff] %vm244_vm3, %v422_v44  ;;  %v1700_v49 = vmul.f32 %v1699_v47, %v2386_v38 }
0x2612   :  { %1702 = vrot.lane.b32.xlu1 %v1700_v49, %s2222_s3  ;;  %v1708_v37 = vadd.f32 %v1707_v7, %v1700_v49 }
0x2613   :  { %v618_v6 = vpop.permute.xlu0 %617 }
0x2614   :  { %621 = vst.msk [vmem:[#allocation9 + $0x18] sm:$0xff] %vm244_vm3, %v618_v6  ;;  %1710 = vrot.lane.b32.xlu0 %v1708_v37, %s2222_s3 }
0x2617   :  { %v814_v50 = vpop.permute.xlu0 %813 }
0x2618   :  { %817 = vst.msk [vmem:[#allocation9 + $0x28] sm:$0xff] %vm244_vm3, %v814_v50 }
0x261b   :  { %v1010_v57 = vpop.permute.xlu0 %1009 }
0x261c   :  { %1013 = vst.msk [vmem:[#allocation9 + $0x38] sm:$0xff] %vm244_vm3, %v1010_v57 }
0x261f   :  { %v1116_v48 = vpop.permute.xlu0 %1115 }
0x2620   :  { %1119 = vst.msk [vmem:[#allocation9 + $0x78] sm:$0xff] %vm244_vm3, %v1116_v48 }
0x2623   :  { %v1284_v38 = vpop.permute.xlu0 %1283 }
0x2624   :  { %1287 = vst.msk [vmem:[#allocation9 + $0x68] sm:$0xff] %vm244_vm3, %v1284_v38 }
0x2627   :  { %v1452_v43 = vpop.permute.xlu0 %1451 }
0x2628   :  { %1455 = vst.msk [vmem:[#allocation9 + $0x58] sm:$0xff] %vm244_vm3, %v1452_v43 }
0x262b   :  { %v1620_v32 = vpop.permute.xlu0 %1619 }
0x262c   :  { %1623 = vst.msk [vmem:[#allocation9 + $0x48] sm:$0xff] %vm244_vm3, %v1620_v32 }
0x2684   :  { %v1703_v0 = vpop.permute.xlu1 %1702 }
0x2685   :  { %1706 = vst.msk [vmem:[#allocation9 + $0x40] sm:$0xff] %vm244_vm3, %v1703_v0 }
0x2686   :  { %v1711_v53 = vpop.permute.xlu0 %1710 }
0x2687   :  { %2171 = shalt.err (!%p2168_p0)
}
0x2688   :  { %s2172_s25 = scalar_lea.hbm %s2853_s8, 2048 }
0x2689   :  { %p2173_p1 = scmp.ne.s32.totalorder %s2853_s8, %s2172_s25  ;;  %p2176_p2 = scmp.lt.u32.totalorder %s2172_s25, %s2853_s8 }
0x268b   :  { %p2178_p3 = pnand %p2176_p2, %p2173_p1 }
0x268d   :  { %2181 = shalt.err (!%p2178_p3)
}
0x268e   :  { %1726 = dma.vmem_to_hbm [thread:$0]  %s1721_s19, 2048, %s2853_s8, [#allocation5], %s2216_s4, %s2216_s4, %s2217_s10   ;;  %1714 = vst.msk [vmem:[#allocation10 + $0x8] sm:$0xff] %vm244_vm3, %v1711_v53 }
0x268f   :  { %s2182_s28 = scalar_lea.vmem %s2807_s18, 256  ;;  %p2187_p5 = scmp.lt.s32.totalorder %s2807_s18, %s2807_s18 }
0x2690   :  { %p2183_p4 = scmp.ne.s32.totalorder %s2807_s18, %s2182_s28  ;;  %p2188_p6 = scmp.lt.s32.totalorder %s2182_s28, %s2182_s28 }
0x2692   :  { %p2189_p7 = por %p2188_p6, %p2187_p5 }
0x2694   :  { %p2190_p8 = pnand %p2189_p7, %p2183_p4 }
0x2696   :  { %2193 = shalt.err (!%p2190_p8)
}
0x2697   :  { %s2194_s30 = scalar_lea.hbm %s2854_s9, 256 }
0x2698   :  { %p2195_p9 = scmp.ne.s32.totalorder %s2854_s9, %s2194_s30  ;;  %p2198_p10 = scmp.lt.u32.totalorder %s2194_s30, %s2854_s9 }
0x269a   :  { %p2200_p11 = pnand %p2198_p10, %p2195_p9 }
0x269c   :  { %2203 = shalt.err (!%p2200_p11)
}
0x269d   :  { %1738 = dma.vmem_to_hbm [thread:$0]  %s2807_s18, 256, %s2854_s9, [#allocation11], %s2216_s4, %s2216_s4, %s2217_s10  }
0x269e   :  { %2208 = dma.done.wait [#allocation5], 2048  }
0x269f   :  { %2209 = vsyncadd [#allocation5], 4294965248 }
0x26a0   :  { %2210 = dma.done.wait [#allocation11], 256  }
0x26a1   :  { %2211 = vsyncadd [#allocation11], 4294967040 }
0x26a2   :  { %1745 = vsyncpa [#allocation4], 1 }
0x26a3   :  { %1746 = vsyncpa [#allocation7], 1 }
0x26a4   :  { %1747 = vsyncpa [#allocation5], 1 }
0x26a5   :  { %1748 = vsyncpa [#allocation11], 1 }

</bundles_post_ra>
